<compile_context>
chip_gen: v5e
topology: v5e:2x2
jax: 0.10.0
libtpu: 0.0.40
codegen_flags: <defaults>
</compile_context>

<pallas_src>
import math

import jax
import jax.numpy as jnp
from jax.experimental import pallas as pl
from jax.experimental.pallas import tpu as pltpu

_PREC = jax.lax.Precision.HIGHEST


def lstm_rating_kernel(seq_ref, proj_ref, ucat_ref, wb_ref, hc0_ref,
                       out_ref, hcT_ref):
    """Gather + sequential LSTM recurrence + linear head in one kernel.

    seq_ref  : (S,)        int32 item ids (SMEM)
    proj_ref : (N, 1, 4H)  precomputed  emb_table @ W_cat + b_cat  per item
                           (gate-major: [i, f, c, o])
    ucat_ref : (H, 4H)     fused hidden->gate weights (gate-major: [i, f, c, o])
    wb_ref   : (H+1, O)    rows 0..H-1 = linear weight (pre-transposed), row H = bias
    hc0_ref  : (2, H)      row 0 = h0, row 1 = c0
    out_ref  : (S, O)      rating scores
    hcT_ref  : (2, H)      row 0 = h_T, row 1 = c_T
    """
    S = seq_ref.shape[0]
    H = ucat_ref.shape[0]

    u_cat = ucat_ref[...]                                     # (H, 4H)
    hc0 = hc0_ref[...]                                        # (2, H)
    h = hc0[0:1, :]                                           # (1, H)
    c = hc0[1:2, :]                                           # (1, H)

    # Fully unrolled recurrence (S is a small compile-time constant).
    # Per step: one in-kernel row gather (independent of the h->c chain, so the
    # scheduler can issue all of them early), ONE (1,H)@(H,4H) dot and two
    # full-128-lane EUP passes.
    hs = []
    for t in range(S):
        xw_t = proj_ref[seq_ref[t]]                           # (1, 4H) dynamic row gather
        gates = xw_t + jnp.dot(h, u_cat, precision=_PREC,
                               preferred_element_type=jnp.float32)   # (1, 4H)
        sig = jax.nn.sigmoid(gates)                           # one EUP pass, all 128 lanes
        tg = jnp.tanh(gates)                                  # one EUP pass, all 128 lanes
        i_t = sig[:, 0 * H:1 * H]
        f_t = sig[:, 1 * H:2 * H]
        g_t = tg[:, 2 * H:3 * H]
        o_t = sig[:, 3 * H:4 * H]
        c = f_t * c + i_t * g_t
        h = o_t * jnp.tanh(c)
        hs.append(h)

    # Value-resident assembly of the hidden sequence, then ONE head matmul and
    # one contiguous store (no scratch, no per-step masked stores).
    hseq = jnp.concatenate(hs, axis=0)                        # (S, H)
    wb = wb_ref[...]                                          # (H+1, O)
    out_ref[...] = jnp.dot(hseq, wb[:H, :], precision=_PREC,
                           preferred_element_type=jnp.float32) + wb[H:H + 1, :]
    hcT_ref[...] = jnp.concatenate([h, c], axis=0)            # (2, H)


def prepare_lstm_rating_params(emb_table, w_stack, u_stack, b_stack, w_lin_t, b_lin):
    """One-time (per weight update) fusion / precompute, hoisted off the call path.

    Returns:
      proj_table : (N, 1, 4H)  emb_table @ W_cat + b_cat, gate-major [i, f, c, o]
      u_cat      : (H, 4H)     fused hidden->gate weights
      wb         : (H+1, O)    packed [W_lin^T ; b_lin]
    """
    N, E = emb_table.shape
    H = u_stack.shape[-1]
    w_cat = jnp.transpose(w_stack, (1, 0, 2)).reshape(E, 4 * H)   # (E, 4H)
    u_cat = jnp.transpose(u_stack, (1, 0, 2)).reshape(H, 4 * H)   # (H, 4H)
    b_cat = b_stack.reshape(1, 4 * H)                             # (1, 4H)
    proj = jnp.dot(emb_table.astype(jnp.float32), w_cat,
                   precision=_PREC) + b_cat                       # (N, 4H)
    proj_table = proj.reshape(N, 1, 4 * H)                        # leading-dim gatherable
    wb = jnp.concatenate([w_lin_t, b_lin], axis=0)                # (H+1, O)
    return proj_table, u_cat, wb


def lstm_rating_forward(sequence, proj_table, u_cat, wb, hc0):
    """Hot path: a single pallas_call, no grid, no wrapper-side XLA gather."""
    S = sequence.shape[0]
    N = proj_table.shape[0]
    H = u_cat.shape[0]
    O = wb.shape[-1]

    smem = pl.BlockSpec(memory_space=pltpu.MemorySpace.SMEM)
    vmem = pl.BlockSpec(memory_space=pltpu.MemorySpace.VMEM)
    out_shapes = (
        jax.ShapeDtypeStruct((S, O), jnp.float32),   # rating scores
        jax.ShapeDtypeStruct((2, H), jnp.float32),   # packed [h_T ; c_T]
    )
    cost = pl.CostEstimate(
        flops=2 * S * H * 4 * H + 2 * S * H * O + 12 * S * H,
        transcendentals=9 * S * H,
        bytes_accessed=4 * (N * 4 * H + H * 4 * H + (H + 1) * O
                            + 2 * H + S * O + 2 * H) + 4 * S,
    )
    scores, hcT = pl.pallas_call(
        lstm_rating_kernel,
        out_shape=out_shapes,
        in_specs=[smem, vmem, vmem, vmem, vmem],
        out_specs=(vmem, vmem),
        cost_estimate=cost,
    )(sequence, proj_table, u_cat, wb, hc0)
    return scores, (hcT[0:1, :], hcT[1:2, :])


def reference_forward(sequence, emb_table, w_stack, u_stack, b_stack,
                      w_lin_t, b_lin, h0, c0):
    """Pure-JAX reference mirroring the PyTorch module (pinned precision)."""
    embeddings = emb_table[sequence]
    h, c = h0, c0
    outs = []
    for t in range(embeddings.shape[0]):
        x_t = embeddings[t:t + 1]
        i_t = jax.nn.sigmoid(jnp.dot(x_t, w_stack[0], precision=_PREC)
                             + jnp.dot(h, u_stack[0], precision=_PREC) + b_stack[0])
        f_t = jax.nn.sigmoid(jnp.dot(x_t, w_stack[1], precision=_PREC)
                             + jnp.dot(h, u_stack[1], precision=_PREC) + b_stack[1])
        g_t = jnp.tanh(jnp.dot(x_t, w_stack[2], precision=_PREC)
                       + jnp.dot(h, u_stack[2], precision=_PREC) + b_stack[2])
        o_t = jax.nn.sigmoid(jnp.dot(x_t, w_stack[3], precision=_PREC)
                             + jnp.dot(h, u_stack[3], precision=_PREC) + b_stack[3])
        c = f_t * c + i_t * g_t
        h = o_t * jnp.tanh(c)
        outs.append(jnp.dot(h, w_lin_t, precision=_PREC) + b_lin)
    return jnp.concatenate(outs, axis=0), (h, c)


if __name__ == "__main__":
    # Small shapes consistent with the module's forward (batch is fixed at 1).
    seq_len = 8
    embedding_dim = 32
    hidden_dim = 32
    num_items = 50
    num_output = 8

    key = jax.random.PRNGKey(0)
    k_emb, k_w, k_u, k_b, k_lw, k_lb, k_seq = jax.random.split(key, 7)

    stdv = 1.0 / math.sqrt(hidden_dim)
    # nn.Embedding default init ~ N(0, 1)
    emb_table = jax.random.normal(k_emb, (num_items, embedding_dim), dtype=jnp.float32)
    # lstm_from_scratch init: uniform(-stdv, stdv) on all params; gate order [i, f, c, o]
    w_stack = jax.random.uniform(k_w, (4, embedding_dim, hidden_dim),
                                 minval=-stdv, maxval=stdv, dtype=jnp.float32)
    u_stack = jax.random.uniform(k_u, (4, hidden_dim, hidden_dim),
                                 minval=-stdv, maxval=stdv, dtype=jnp.float32)
    b_stack = jax.random.uniform(k_b, (4, 1, hidden_dim),
                                 minval=-stdv, maxval=stdv, dtype=jnp.float32)
    # nn.Linear(hidden_dim, num_output): uniform(-1/sqrt(in), 1/sqrt(in)); stored transposed
    lin_std = 1.0 / math.sqrt(hidden_dim)
    w_lin_t = jax.random.uniform(k_lw, (hidden_dim, num_output),
                                 minval=-lin_std, maxval=lin_std, dtype=jnp.float32)
    b_lin = jax.random.uniform(k_lb, (1, num_output),
                               minval=-lin_std, maxval=lin_std, dtype=jnp.float32)
    # self.hidden = zeros (module keeps it as state; we pass it packed per call)
    h0 = jnp.zeros((1, hidden_dim), dtype=jnp.float32)
    c0 = jnp.zeros((1, hidden_dim), dtype=jnp.float32)

    sequence = jax.random.randint(k_seq, (seq_len,), 0, num_items, dtype=jnp.int32)

    # One-time parameter fusion / projection precompute (off the per-call path).
    proj_table, u_cat, wb = prepare_lstm_rating_params(
        emb_table, w_stack, u_stack, b_stack, w_lin_t, b_lin)
    hc0 = jnp.concatenate([h0, c0], axis=0)

    scores, (h_t, c_t) = lstm_rating_forward(sequence, proj_table, u_cat, wb, hc0)
    jax.block_until_ready((scores, h_t, c_t))

    ref_scores, (ref_h, ref_c) = reference_forward(
        sequence, emb_table, w_stack, u_stack, b_stack, w_lin_t, b_lin, h0, c0)

    assert scores.shape == (seq_len, num_output)
    assert bool(jnp.allclose(scores, ref_scores, atol=1e-5, rtol=1e-5))
    assert bool(jnp.allclose(h_t, ref_h, atol=1e-5, rtol=1e-5))
    assert bool(jnp.allclose(c_t, ref_c, atol=1e-5, rtol=1e-5))

    print("KERNEL_OK")
</pallas_src>

<mosaic_0001>
module attributes {stable_mosaic.version = 11 : i64} {
  func.func @lstm_rating_kernel(%arg0: memref<8xi32, #tpu.memory_space<smem>>, %arg1: memref<50x1x128xf32, #tpu.memory_space<vmem>>, %arg2: memref<32x128xf32, #tpu.memory_space<vmem>>, %arg3: memref<33x8xf32, #tpu.memory_space<vmem>>, %arg4: memref<2x32xf32, #tpu.memory_space<vmem>>, %arg5: memref<8x8xf32, #tpu.memory_space<vmem>>, %arg6: memref<2x32xf32, #tpu.memory_space<vmem>>) attributes {dimension_semantics = [], scalar_prefetch = 0 : i64, scratch_operands = 0 : i64, tpu.core_type = #tpu.core_type<tc>} {
    %c0 = arith.constant 0 : index
    %c0_0 = arith.constant 0 : index
    %0 = vector.load %arg2[%c0, %c0_0] : memref<32x128xf32, #tpu.memory_space<vmem>>, vector<32x128xf32>
    %c0_1 = arith.constant 0 : index
    %c0_2 = arith.constant 0 : index
    %1 = vector.load %arg4[%c0_1, %c0_2] : memref<2x32xf32, #tpu.memory_space<vmem>>, vector<2x32xf32>
    %2 = vector.extract_strided_slice %1 {offsets = [0, 0], sizes = [1, 32], strides = [1, 1]} : vector<2x32xf32> to vector<1x32xf32>
    %3 = vector.extract_strided_slice %1 {offsets = [1, 0], sizes = [1, 32], strides = [1, 1]} : vector<2x32xf32> to vector<1x32xf32>
    %c0_3 = arith.constant 0 : index
    %4 = memref.load %arg0[%c0_3] : memref<8xi32, #tpu.memory_space<smem>>
    %5 = arith.index_cast %4 : i32 to index
    %c0_4 = arith.constant 0 : index
    %c0_5 = arith.constant 0 : index
    %6 = vector.load %arg1[%5, %c0_4, %c0_5] : memref<50x1x128xf32, #tpu.memory_space<vmem>>, vector<1x1x128xf32>
    %7 = vector.shape_cast %6 : vector<1x1x128xf32> to vector<1x128xf32>
    %cst = arith.constant dense<0.000000e+00> : vector<1x128xf32>
    %8 = tpu.matmul %2, %0, %cst {dimension_numbers = #tpu.dot_dimension_numbers<[1], [0], [0], [1], [0, 0, 1, 1], [], []>, precision = #tpu.contract_precision<fp32>} : vector<1x32xf32>, vector<32x128xf32>, vector<1x128xf32> -> vector<1x128xf32>
    %9 = arith.addf %7, %8 : vector<1x128xf32>
    %10 = arith.negf %9 : vector<1x128xf32>
    %11 = math.exp %10 : vector<1x128xf32>
    %cst_6 = arith.constant 1.000000e+00 : f32
    %12 = vector.broadcast %cst_6 : f32 to vector<1x128xf32>
    %13 = arith.addf %12, %11 : vector<1x128xf32>
    %14 = arith.divf %12, %13 : vector<1x128xf32>
    %15 = math.tanh %9 : vector<1x128xf32>
    %16 = vector.extract_strided_slice %14 {offsets = [0, 0], sizes = [1, 32], strides = [1, 1]} : vector<1x128xf32> to vector<1x32xf32>
    %17 = vector.extract_strided_slice %14 {offsets = [0, 32], sizes = [1, 32], strides = [1, 1]} : vector<1x128xf32> to vector<1x32xf32>
    %18 = vector.extract_strided_slice %15 {offsets = [0, 64], sizes = [1, 32], strides = [1, 1]} : vector<1x128xf32> to vector<1x32xf32>
    %19 = vector.extract_strided_slice %14 {offsets = [0, 96], sizes = [1, 32], strides = [1, 1]} : vector<1x128xf32> to vector<1x32xf32>
    %20 = arith.mulf %17, %3 : vector<1x32xf32>
    %21 = arith.mulf %16, %18 : vector<1x32xf32>
    %22 = arith.addf %20, %21 : vector<1x32xf32>
    %23 = math.tanh %22 : vector<1x32xf32>
    %24 = arith.mulf %19, %23 : vector<1x32xf32>
    %c1 = arith.constant 1 : index
    %25 = memref.load %arg0[%c1] : memref<8xi32, #tpu.memory_space<smem>>
    %26 = arith.index_cast %25 : i32 to index
    %c0_7 = arith.constant 0 : index
    %c0_8 = arith.constant 0 : index
    %27 = vector.load %arg1[%26, %c0_7, %c0_8] : memref<50x1x128xf32, #tpu.memory_space<vmem>>, vector<1x1x128xf32>
    %28 = vector.shape_cast %27 : vector<1x1x128xf32> to vector<1x128xf32>
    %cst_9 = arith.constant dense<0.000000e+00> : vector<1x128xf32>
    %29 = tpu.matmul %24, %0, %cst_9 {dimension_numbers = #tpu.dot_dimension_numbers<[1], [0], [0], [1], [0, 0, 1, 1], [], []>, precision = #tpu.contract_precision<fp32>} : vector<1x32xf32>, vector<32x128xf32>, vector<1x128xf32> -> vector<1x128xf32>
    %30 = arith.addf %28, %29 : vector<1x128xf32>
    %31 = arith.negf %30 : vector<1x128xf32>
    %32 = math.exp %31 : vector<1x128xf32>
    %cst_10 = arith.constant 1.000000e+00 : f32
    %33 = vector.broadcast %cst_10 : f32 to vector<1x128xf32>
    %34 = arith.addf %33, %32 : vector<1x128xf32>
    %35 = arith.divf %33, %34 : vector<1x128xf32>
    %36 = math.tanh %30 : vector<1x128xf32>
    %37 = vector.extract_strided_slice %35 {offsets = [0, 0], sizes = [1, 32], strides = [1, 1]} : vector<1x128xf32> to vector<1x32xf32>
    %38 = vector.extract_strided_slice %35 {offsets = [0, 32], sizes = [1, 32], strides = [1, 1]} : vector<1x128xf32> to vector<1x32xf32>
    %39 = vector.extract_strided_slice %36 {offsets = [0, 64], sizes = [1, 32], strides = [1, 1]} : vector<1x128xf32> to vector<1x32xf32>
    %40 = vector.extract_strided_slice %35 {offsets = [0, 96], sizes = [1, 32], strides = [1, 1]} : vector<1x128xf32> to vector<1x32xf32>
    %41 = arith.mulf %38, %22 : vector<1x32xf32>
    %42 = arith.mulf %37, %39 : vector<1x32xf32>
    %43 = arith.addf %41, %42 : vector<1x32xf32>
    %44 = math.tanh %43 : vector<1x32xf32>
    %45 = arith.mulf %40, %44 : vector<1x32xf32>
    %c2 = arith.constant 2 : index
    %46 = memref.load %arg0[%c2] : memref<8xi32, #tpu.memory_space<smem>>
    %47 = arith.index_cast %46 : i32 to index
    %c0_11 = arith.constant 0 : index
    %c0_12 = arith.constant 0 : index
    %48 = vector.load %arg1[%47, %c0_11, %c0_12] : memref<50x1x128xf32, #tpu.memory_space<vmem>>, vector<1x1x128xf32>
    %49 = vector.shape_cast %48 : vector<1x1x128xf32> to vector<1x128xf32>
    %cst_13 = arith.constant dense<0.000000e+00> : vector<1x128xf32>
    %50 = tpu.matmul %45, %0, %cst_13 {dimension_numbers = #tpu.dot_dimension_numbers<[1], [0], [0], [1], [0, 0, 1, 1], [], []>, precision = #tpu.contract_precision<fp32>} : vector<1x32xf32>, vector<32x128xf32>, vector<1x128xf32> -> vector<1x128xf32>
    %51 = arith.addf %49, %50 : vector<1x128xf32>
    %52 = arith.negf %51 : vector<1x128xf32>
    %53 = math.exp %52 : vector<1x128xf32>
    %cst_14 = arith.constant 1.000000e+00 : f32
    %54 = vector.broadcast %cst_14 : f32 to vector<1x128xf32>
    %55 = arith.addf %54, %53 : vector<1x128xf32>
    %56 = arith.divf %54, %55 : vector<1x128xf32>
    %57 = math.tanh %51 : vector<1x128xf32>
    %58 = vector.extract_strided_slice %56 {offsets = [0, 0], sizes = [1, 32], strides = [1, 1]} : vector<1x128xf32> to vector<1x32xf32>
    %59 = vector.extract_strided_slice %56 {offsets = [0, 32], sizes = [1, 32], strides = [1, 1]} : vector<1x128xf32> to vector<1x32xf32>
    %60 = vector.extract_strided_slice %57 {offsets = [0, 64], sizes = [1, 32], strides = [1, 1]} : vector<1x128xf32> to vector<1x32xf32>
    %61 = vector.extract_strided_slice %56 {offsets = [0, 96], sizes = [1, 32], strides = [1, 1]} : vector<1x128xf32> to vector<1x32xf32>
    %62 = arith.mulf %59, %43 : vector<1x32xf32>
    %63 = arith.mulf %58, %60 : vector<1x32xf32>
    %64 = arith.addf %62, %63 : vector<1x32xf32>
    %65 = math.tanh %64 : vector<1x32xf32>
    %66 = arith.mulf %61, %65 : vector<1x32xf32>
    %c3 = arith.constant 3 : index
    %67 = memref.load %arg0[%c3] : memref<8xi32, #tpu.memory_space<smem>>
    %68 = arith.index_cast %67 : i32 to index
    %c0_15 = arith.constant 0 : index
    %c0_16 = arith.constant 0 : index
    %69 = vector.load %arg1[%68, %c0_15, %c0_16] : memref<50x1x128xf32, #tpu.memory_space<vmem>>, vector<1x1x128xf32>
    %70 = vector.shape_cast %69 : vector<1x1x128xf32> to vector<1x128xf32>
    %cst_17 = arith.constant dense<0.000000e+00> : vector<1x128xf32>
    %71 = tpu.matmul %66, %0, %cst_17 {dimension_numbers = #tpu.dot_dimension_numbers<[1], [0], [0], [1], [0, 0, 1, 1], [], []>, precision = #tpu.contract_precision<fp32>} : vector<1x32xf32>, vector<32x128xf32>, vector<1x128xf32> -> vector<1x128xf32>
    %72 = arith.addf %70, %71 : vector<1x128xf32>
    %73 = arith.negf %72 : vector<1x128xf32>
    %74 = math.exp %73 : vector<1x128xf32>
    %cst_18 = arith.constant 1.000000e+00 : f32
    %75 = vector.broadcast %cst_18 : f32 to vector<1x128xf32>
    %76 = arith.addf %75, %74 : vector<1x128xf32>
    %77 = arith.divf %75, %76 : vector<1x128xf32>
    %78 = math.tanh %72 : vector<1x128xf32>
    %79 = vector.extract_strided_slice %77 {offsets = [0, 0], sizes = [1, 32], strides = [1, 1]} : vector<1x128xf32> to vector<1x32xf32>
    %80 = vector.extract_strided_slice %77 {offsets = [0, 32], sizes = [1, 32], strides = [1, 1]} : vector<1x128xf32> to vector<1x32xf32>
    %81 = vector.extract_strided_slice %78 {offsets = [0, 64], sizes = [1, 32], strides = [1, 1]} : vector<1x128xf32> to vector<1x32xf32>
    %82 = vector.extract_strided_slice %77 {offsets = [0, 96], sizes = [1, 32], strides = [1, 1]} : vector<1x128xf32> to vector<1x32xf32>
    %83 = arith.mulf %80, %64 : vector<1x32xf32>
    %84 = arith.mulf %79, %81 : vector<1x32xf32>
    %85 = arith.addf %83, %84 : vector<1x32xf32>
    %86 = math.tanh %85 : vector<1x32xf32>
    %87 = arith.mulf %82, %86 : vector<1x32xf32>
    %c4 = arith.constant 4 : index
    %88 = memref.load %arg0[%c4] : memref<8xi32, #tpu.memory_space<smem>>
    %89 = arith.index_cast %88 : i32 to index
    %c0_19 = arith.constant 0 : index
    %c0_20 = arith.constant 0 : index
    %90 = vector.load %arg1[%89, %c0_19, %c0_20] : memref<50x1x128xf32, #tpu.memory_space<vmem>>, vector<1x1x128xf32>
    %91 = vector.shape_cast %90 : vector<1x1x128xf32> to vector<1x128xf32>
    %cst_21 = arith.constant dense<0.000000e+00> : vector<1x128xf32>
    %92 = tpu.matmul %87, %0, %cst_21 {dimension_numbers = #tpu.dot_dimension_numbers<[1], [0], [0], [1], [0, 0, 1, 1], [], []>, precision = #tpu.contract_precision<fp32>} : vector<1x32xf32>, vector<32x128xf32>, vector<1x128xf32> -> vector<1x128xf32>
    %93 = arith.addf %91, %92 : vector<1x128xf32>
    %94 = arith.negf %93 : vector<1x128xf32>
    %95 = math.exp %94 : vector<1x128xf32>
    %cst_22 = arith.constant 1.000000e+00 : f32
    %96 = vector.broadcast %cst_22 : f32 to vector<1x128xf32>
    %97 = arith.addf %96, %95 : vector<1x128xf32>
    %98 = arith.divf %96, %97 : vector<1x128xf32>
    %99 = math.tanh %93 : vector<1x128xf32>
    %100 = vector.extract_strided_slice %98 {offsets = [0, 0], sizes = [1, 32], strides = [1, 1]} : vector<1x128xf32> to vector<1x32xf32>
    %101 = vector.extract_strided_slice %98 {offsets = [0, 32], sizes = [1, 32], strides = [1, 1]} : vector<1x128xf32> to vector<1x32xf32>
    %102 = vector.extract_strided_slice %99 {offsets = [0, 64], sizes = [1, 32], strides = [1, 1]} : vector<1x128xf32> to vector<1x32xf32>
    %103 = vector.extract_strided_slice %98 {offsets = [0, 96], sizes = [1, 32], strides = [1, 1]} : vector<1x128xf32> to vector<1x32xf32>
    %104 = arith.mulf %101, %85 : vector<1x32xf32>
    %105 = arith.mulf %100, %102 : vector<1x32xf32>
    %106 = arith.addf %104, %105 : vector<1x32xf32>
    %107 = math.tanh %106 : vector<1x32xf32>
    %108 = arith.mulf %103, %107 : vector<1x32xf32>
    %c5 = arith.constant 5 : index
    %109 = memref.load %arg0[%c5] : memref<8xi32, #tpu.memory_space<smem>>
    %110 = arith.index_cast %109 : i32 to index
    %c0_23 = arith.constant 0 : index
    %c0_24 = arith.constant 0 : index
    %111 = vector.load %arg1[%110, %c0_23, %c0_24] : memref<50x1x128xf32, #tpu.memory_space<vmem>>, vector<1x1x128xf32>
    %112 = vector.shape_cast %111 : vector<1x1x128xf32> to vector<1x128xf32>
    %cst_25 = arith.constant dense<0.000000e+00> : vector<1x128xf32>
    %113 = tpu.matmul %108, %0, %cst_25 {dimension_numbers = #tpu.dot_dimension_numbers<[1], [0], [0], [1], [0, 0, 1, 1], [], []>, precision = #tpu.contract_precision<fp32>} : vector<1x32xf32>, vector<32x128xf32>, vector<1x128xf32> -> vector<1x128xf32>
    %114 = arith.addf %112, %113 : vector<1x128xf32>
    %115 = arith.negf %114 : vector<1x128xf32>
    %116 = math.exp %115 : vector<1x128xf32>
    %cst_26 = arith.constant 1.000000e+00 : f32
    %117 = vector.broadcast %cst_26 : f32 to vector<1x128xf32>
    %118 = arith.addf %117, %116 : vector<1x128xf32>
    %119 = arith.divf %117, %118 : vector<1x128xf32>
    %120 = math.tanh %114 : vector<1x128xf32>
    %121 = vector.extract_strided_slice %119 {offsets = [0, 0], sizes = [1, 32], strides = [1, 1]} : vector<1x128xf32> to vector<1x32xf32>
    %122 = vector.extract_strided_slice %119 {offsets = [0, 32], sizes = [1, 32], strides = [1, 1]} : vector<1x128xf32> to vector<1x32xf32>
    %123 = vector.extract_strided_slice %120 {offsets = [0, 64], sizes = [1, 32], strides = [1, 1]} : vector<1x128xf32> to vector<1x32xf32>
    %124 = vector.extract_strided_slice %119 {offsets = [0, 96], sizes = [1, 32], strides = [1, 1]} : vector<1x128xf32> to vector<1x32xf32>
    %125 = arith.mulf %122, %106 : vector<1x32xf32>
    %126 = arith.mulf %121, %123 : vector<1x32xf32>
    %127 = arith.addf %125, %126 : vector<1x32xf32>
    %128 = math.tanh %127 : vector<1x32xf32>
    %129 = arith.mulf %124, %128 : vector<1x32xf32>
    %c6 = arith.constant 6 : index
    %130 = memref.load %arg0[%c6] : memref<8xi32, #tpu.memory_space<smem>>
    %131 = arith.index_cast %130 : i32 to index
    %c0_27 = arith.constant 0 : index
    %c0_28 = arith.constant 0 : index
    %132 = vector.load %arg1[%131, %c0_27, %c0_28] : memref<50x1x128xf32, #tpu.memory_space<vmem>>, vector<1x1x128xf32>
    %133 = vector.shape_cast %132 : vector<1x1x128xf32> to vector<1x128xf32>
    %cst_29 = arith.constant dense<0.000000e+00> : vector<1x128xf32>
    %134 = tpu.matmul %129, %0, %cst_29 {dimension_numbers = #tpu.dot_dimension_numbers<[1], [0], [0], [1], [0, 0, 1, 1], [], []>, precision = #tpu.contract_precision<fp32>} : vector<1x32xf32>, vector<32x128xf32>, vector<1x128xf32> -> vector<1x128xf32>
    %135 = arith.addf %133, %134 : vector<1x128xf32>
    %136 = arith.negf %135 : vector<1x128xf32>
    %137 = math.exp %136 : vector<1x128xf32>
    %cst_30 = arith.constant 1.000000e+00 : f32
    %138 = vector.broadcast %cst_30 : f32 to vector<1x128xf32>
    %139 = arith.addf %138, %137 : vector<1x128xf32>
    %140 = arith.divf %138, %139 : vector<1x128xf32>
    %141 = math.tanh %135 : vector<1x128xf32>
    %142 = vector.extract_strided_slice %140 {offsets = [0, 0], sizes = [1, 32], strides = [1, 1]} : vector<1x128xf32> to vector<1x32xf32>
    %143 = vector.extract_strided_slice %140 {offsets = [0, 32], sizes = [1, 32], strides = [1, 1]} : vector<1x128xf32> to vector<1x32xf32>
    %144 = vector.extract_strided_slice %141 {offsets = [0, 64], sizes = [1, 32], strides = [1, 1]} : vector<1x128xf32> to vector<1x32xf32>
    %145 = vector.extract_strided_slice %140 {offsets = [0, 96], sizes = [1, 32], strides = [1, 1]} : vector<1x128xf32> to vector<1x32xf32>
    %146 = arith.mulf %143, %127 : vector<1x32xf32>
    %147 = arith.mulf %142, %144 : vector<1x32xf32>
    %148 = arith.addf %146, %147 : vector<1x32xf32>
    %149 = math.tanh %148 : vector<1x32xf32>
    %150 = arith.mulf %145, %149 : vector<1x32xf32>
    %c7 = arith.constant 7 : index
    %151 = memref.load %arg0[%c7] : memref<8xi32, #tpu.memory_space<smem>>
    %152 = arith.index_cast %151 : i32 to index
    %c0_31 = arith.constant 0 : index
    %c0_32 = arith.constant 0 : index
    %153 = vector.load %arg1[%152, %c0_31, %c0_32] : memref<50x1x128xf32, #tpu.memory_space<vmem>>, vector<1x1x128xf32>
    %154 = vector.shape_cast %153 : vector<1x1x128xf32> to vector<1x128xf32>
    %cst_33 = arith.constant dense<0.000000e+00> : vector<1x128xf32>
    %155 = tpu.matmul %150, %0, %cst_33 {dimension_numbers = #tpu.dot_dimension_numbers<[1], [0], [0], [1], [0, 0, 1, 1], [], []>, precision = #tpu.contract_precision<fp32>} : vector<1x32xf32>, vector<32x128xf32>, vector<1x128xf32> -> vector<1x128xf32>
    %156 = arith.addf %154, %155 : vector<1x128xf32>
    %157 = arith.negf %156 : vector<1x128xf32>
    %158 = math.exp %157 : vector<1x128xf32>
    %cst_34 = arith.constant 1.000000e+00 : f32
    %159 = vector.broadcast %cst_34 : f32 to vector<1x128xf32>
    %160 = arith.addf %159, %158 : vector<1x128xf32>
    %161 = arith.divf %159, %160 : vector<1x128xf32>
    %162 = math.tanh %156 : vector<1x128xf32>
    %163 = vector.extract_strided_slice %161 {offsets = [0, 0], sizes = [1, 32], strides = [1, 1]} : vector<1x128xf32> to vector<1x32xf32>
    %164 = vector.extract_strided_slice %161 {offsets = [0, 32], sizes = [1, 32], strides = [1, 1]} : vector<1x128xf32> to vector<1x32xf32>
    %165 = vector.extract_strided_slice %162 {offsets = [0, 64], sizes = [1, 32], strides = [1, 1]} : vector<1x128xf32> to vector<1x32xf32>
    %166 = vector.extract_strided_slice %161 {offsets = [0, 96], sizes = [1, 32], strides = [1, 1]} : vector<1x128xf32> to vector<1x32xf32>
    %167 = arith.mulf %164, %148 : vector<1x32xf32>
    %168 = arith.mulf %163, %165 : vector<1x32xf32>
    %169 = arith.addf %167, %168 : vector<1x32xf32>
    %170 = math.tanh %169 : vector<1x32xf32>
    %171 = arith.mulf %166, %170 : vector<1x32xf32>
    %172 = tpu.concatenate %24, %45, %66, %87, %108, %129, %150, %171 in 0 : vector<1x32xf32>, vector<1x32xf32>, vector<1x32xf32>, vector<1x32xf32>, vector<1x32xf32>, vector<1x32xf32>, vector<1x32xf32>, vector<1x32xf32> -> vector<8x32xf32>
    %c0_35 = arith.constant 0 : index
    %c0_36 = arith.constant 0 : index
    %173 = vector.load %arg3[%c0_35, %c0_36] : memref<33x8xf32, #tpu.memory_space<vmem>>, vector<33x8xf32>
    %174 = vector.extract_strided_slice %173 {offsets = [0, 0], sizes = [32, 8], strides = [1, 1]} : vector<33x8xf32> to vector<32x8xf32>
    %cst_37 = arith.constant dense<0.000000e+00> : vector<8x8xf32>
    %175 = tpu.matmul %172, %174, %cst_37 {dimension_numbers = #tpu.dot_dimension_numbers<[1], [0], [0], [1], [0, 0, 1, 1], [], []>, precision = #tpu.contract_precision<fp32>} : vector<8x32xf32>, vector<32x8xf32>, vector<8x8xf32> -> vector<8x8xf32>
    %176 = vector.extract_strided_slice %173 {offsets = [32, 0], sizes = [1, 8], strides = [1, 1]} : vector<33x8xf32> to vector<1x8xf32>
    %177 = vector.broadcast %176 : vector<1x8xf32> to vector<8x8xf32>
    %178 = arith.addf %175, %177 : vector<8x8xf32>
    %c0_38 = arith.constant 0 : index
    %c0_39 = arith.constant 0 : index
    %179 = vector.load %arg5[%c0_38, %c0_39] : memref<8x8xf32, #tpu.memory_space<vmem>>, vector<8x8xf32>
    tpu.vector_store %arg5[%c0_38, %c0_39], %178 {strides = array<i32>} : memref<8x8xf32, #tpu.memory_space<vmem>>, vector<8x8xf32>,
    %180 = tpu.concatenate %171, %169 in 0 : vector<1x32xf32>, vector<1x32xf32> -> vector<2x32xf32>
    %c0_40 = arith.constant 0 : index
    %c0_41 = arith.constant 0 : index
    %181 = vector.load %arg6[%c0_40, %c0_41] : memref<2x32xf32, #tpu.memory_space<vmem>>, vector<2x32xf32>
    tpu.vector_store %arg6[%c0_40, %c0_41], %180 {strides = array<i32>} : memref<2x32xf32, #tpu.memory_space<vmem>>, vector<2x32xf32>,
    return
  }
}

</mosaic_0001>

<bundles_post_ra>
// kernel: tpu_custom_call.1
= control target key start
LH: loop header
LB: loop body
LE: loop exit
PB: predicated region body
PF: predicated region fallthrough
CT: control target
= control target key end

     0   :  { %12 = vsyncpa [#allocation5], 0  ;;  %s2798_s0 = inlined_call_operand.vmem [shape: s32[8], index: 0, kind: input, shape index: {}]   ;;  %s2799_s1 = inlined_call_operand.hbm [shape: f32[50,1,128], index: 1, kind: input, shape index: {}]   ;;  %s2800_s2 = inlined_call_operand.vmem [shape: f32[32,128], index: 2, kind: input, shape index: {}]   ;;  %s2801_s3 = inlined_call_operand.vmem [shape: f32[33,8], index: 3, kind: input, shape index: {}]   ;;  %s2802_s4 = inlined_call_operand.vmem [shape: f32[2,32], index: 4, kind: input, shape index: {}]   ;;  %s2803_s5 = inlined_call_operand.hbm [shape: f32[8,8], index: 5, kind: output, shape index: {0}]   ;;  %s2804_s6 = inlined_call_operand.hbm [shape: f32[2,32], index: 6, kind: output, shape index: {1}]  }
   0x1   :  { %13 = vsyncpa [#allocation3], 0 }
   0x2   :  { %14 = vsyncpa [#allocation4], 0 }
   0x3   :  { %15 = vsyncpa [#allocation9], 0  ;;  %s21_s23 = sshll.u32 %s2798_s0, 4  ;;  %s29_s26 = sshll.u32 %s2799_s1, 4  ;;  %s22_s23 = int_to_ptr.vmem [resolvable:$true] %s21_s23  ;;  %s30_s26 = int_to_ptr.hbm [resolvable:$true] %s29_s26 }
   0x4   :  { %s2373_s27 = smov [#allocation2]   ;;  %s2374_s28 = smov [#allocation6]  }
   0x5   :  { %24 = dma.vmem_to_smem %s22_s23, 16, %s2373_s27, [#allocation5]  }
   0x6   :  { %s31_s29 = sshll.u32 %s2374_s28, 4  ;;  %s2375_s30 = smov 16   ;;  %s32_s29 = int_to_ptr.vmem [resolvable:$true] %s31_s29 }
   0x7   :  { %s2376_s7 = smov 1  }
   0x8   :  { %37 = dma.hbm_to_vmem [thread:$0]  %s30_s26, 800, %s32_s29, [#allocation3], %s2375_s30, %s2375_s30, %s2376_s7  }
   0x9   :  { %2365 = dma.done.wait [#allocation5], 16  }
   0xa   :  { %2366 = vsyncadd [#allocation5], 4294967280 }
   0xb   :  { %2367 = dma.done.wait [#allocation3], 800  }
   0xc   :  { %2368 = vsyncadd [#allocation3], 4294966496 }
   0xd   :  { %52 = sfence }
   0xe   :  { %v56_v0 = vld [vmem:[%s2800_s2 + $0x18] sm:$0xff]  ;;  %v55_v1 = vld [vmem:[%s2800_s2 + $0x10] sm:$0xff]  ;;  %v54_v2 = vld [vmem:[%s2800_s2 + $0x8] sm:$0xff]  ;;  %vm61_vm0 = vcmask 261120   ;;  %s2377_s16 = smov 64   ;;  %s2378_s17 = smov 32  }
   0xf   :  { %v2431_v3 = vand.u32 4294901760, %v56_v0  ;;  %v2433_v4 = vand.u32 4294901760, %v55_v1  ;;  %v2435_v5 = vand.u32 4294901760, %v54_v2  ;;  %v53_v6 = vld [vmem:[%s2800_s2] sm:$0xff]  ;;  %s58_s2 = sld [smem:[#allocation2]]  ;;  %vm1927_vm13 = vcmask 1040384  }
  0x10   :  { %v57_v7 = vld [vmem:[%s2802_s4] sm:$0x3]  ;;  %v2443_v8 = vand.u32 4294901760, %v53_v6  ;;  %s2194_s18 = sld [smem:[#allocation2 + $0x1]]  ;;  %vm1929_vm14 = vcmask 1041408   ;;  %s2379_s14 = smov [#allocation8]  }
  0x11   :  { %v63_v9 = vsel %vm61_vm0, %v57_v7, 0  ;;  %271 = vst [vmem:[#allocation1] sm:$0xff] %v57_v7  ;;  %v2447_v10 = vsub.f32 %v56_v0, %v2431_v3  ;;  %78 = vmatpush.msra.mxu0 %v2431_v3  ;;  %v2451_v11 = vsub.f32 %v55_v1, %v2433_v4  ;;  %178 = vmatpush.msra.mxu3 %v2431_v3  ;;  %s2196_s20 = sld [smem:[#allocation2 + $0x2]]  ;;  %s2167_s15 = sshll.u32 %s2379_s14, 4  ;;  %s2168_s15 = int_to_ptr.vmem [resolvable:$true] %s2167_s15 }
  0x12   :  { %v2455_v12 = vsub.f32 %v54_v2, %v2435_v5  ;;  %v85_v13 = vand.u32 4294901760, %v63_v9  ;;  %v2458_v14 = vsub.f32 %v53_v6, %v2443_v8  ;;  %s2198_s22 = sld [smem:[#allocation2 + $0x3]] }
  0x13   :  { %149 = vmatpush.msra.mxu2 %v2447_v10  ;;  %80 = vmatpush.msra.mxu0 %v2433_v4  ;;  %v2463_v15 = vand.u32 4294901760, %v2447_v10  ;;  %v2466_v16 = vand.u32 4294901760, %v2451_v11  ;;  %s2200_s24 = sld [smem:[#allocation2 + $0x4]] }
  0x14   :  { %v86_v17 = vsub.f32 %v63_v9, %v85_v13  ;;  %v2469_v18 = vand.u32 4294901760, %v2455_v12  ;;  %180 = vmatpush.msra.mxu3 %v2433_v4  ;;  %v2473_v19 = vand.u32 4294901760, %v2458_v14  ;;  %s2202_s26 = sld [smem:[#allocation2 + $0x5]] }
  0x15   :  { %152 = vmatpush.msra.mxu2 %v2451_v11  ;;  %v109_v20 = vsub.f32 %v2447_v10, %v2463_v15  ;;  %82 = vmatpush.msra.mxu0 %v2435_v5  ;;  %v115_v21 = vsub.f32 %v2451_v11, %v2466_v16  ;;  %s59_s4 = scalar_lea.vmem [#allocation6], %s58_s2  ;;  %s2204_s28 = sld [smem:[#allocation2 + $0x6]] }
  0x16   :  { %v121_v22 = vsub.f32 %v2455_v12, %v2469_v18  ;;  %v87_v23 = vand.u32 4294901760, %v86_v17  ;;  %182 = vmatpush.msra.mxu3 %v2435_v5  ;;  %v127_v27 = vsub.f32 %v2458_v14, %v2473_v19  ;;  %v60_v40 = vld [vmem:[%s59_s4] sm:$0x1]  ;;  %s295_s19 = scalar_lea.vmem [#allocation6], %s2194_s18  ;;  %s2206_s30 = sld [smem:[#allocation2 + $0x7]] }
  0x17   :  { %v2484_v24 = vand.u32 4294901760, %v109_v20  ;;  %155 = vmatpush.msra.mxu2 %v2455_v12  ;;  %v2487_v25 = vand.u32 4294901760, %v115_v21  ;;  %84 = vmatpush.msra.mxu0 %v2443_v8  ;;  %s527_s21 = scalar_lea.vmem [#allocation6], %s2196_s20 }
  0x18   :  { %v88_v26 = vsub.f32 %v86_v17, %v87_v23  ;;  %184 = vmatpush.msra.mxu3 %v2443_v8  ;;  %v2496_v28 = vand.u32 4294901760, %v121_v22  ;;  %v2499_v30 = vand.u32 4294901760, %v127_v27  ;;  %v273_v45 = vld [vmem:[#allocation1 + $0x1] ss:$9 sm:$0xff]  ;;  %s759_s23 = scalar_lea.vmem [#allocation6], %s2198_s22  ;;  %s2158_s22 = sshll.u32 %s2803_s5, 4  ;;  %s2159_s22 = int_to_ptr.hbm [resolvable:$true] %s2158_s22 }
  0x19   :  { %207 = vmatpush.msrb.mxu0 %v2463_v15  ;;  %111 = vmatpush.msra.mxu1 %v2484_v24  ;;  %s991_s25 = scalar_lea.vmem [#allocation6], %s2200_s24 }
  0x1a   :  { %158 = vmatpush.msra.mxu2 %v2458_v14  ;;  %v89_v29 = vand.u32 4294901760, %v88_v26  ;;  %188 = vmatmul.f32.vlgmr.msra.gmra.mxu3 %v87_v23  ;;  %s1223_s27 = scalar_lea.vmem [#allocation6], %s2202_s26 }
  0x1b   :  { %161 = vmatmul.f32.vlgmr.msra.gmra.mxu2 %v86_v17  ;;  %117 = vmatpush.msra.mxu1 %v2487_v25  ;;  %s1455_s29 = scalar_lea.vmem [#allocation6], %s2204_s28 }
  0x1c   :  { %90 = vmatmul.f32.vlgmr.msra.gmra.mxu0 %v89_v29  ;;  %349 = vmatpush.msrb.mxu3 %v2484_v24  ;;  %s1687_s7 = scalar_lea.vmem [#allocation6], %s2206_s30 }
  0x1d   :  { %211 = vmatpush.msrb.mxu0 %v2466_v16  ;;  %123 = vmatpush.msra.mxu1 %v2496_v28 }
  0x1e   :  { %316 = vmatpush.msrb.mxu2 %v2431_v3  ;;  %355 = vmatpush.msrb.mxu3 %v2487_v25 }
  0x1f   :  { %215 = vmatpush.msrb.mxu0 %v2469_v18  ;;  %129 = vmatpush.msra.mxu1 %v2499_v30 }
  0x20   :  { %318 = vmatpush.msrb.mxu2 %v2433_v4  ;;  %131 = vmatmul.f32.vlgmr.msra.gmra.mxu1 %v85_v13 }
  0x21   :  { %219 = vmatpush.msrb.mxu0 %v2473_v19  ;;  %238 = vmatpush.msrb.mxu1 %v2431_v3 }
  0x22   :  { %361 = vmatpush.msrb.mxu3 %v2496_v28  ;;  %320 = vmatpush.msrb.mxu2 %v2435_v5 }
  0x23   :  { %387 = vmatpush.msra.mxu0 %v2447_v10  ;;  %240 = vmatpush.msrb.mxu1 %v2433_v4 }
  0x24   :  { %221 = vmatmul.f32.vlgmr.msrb.gmra.mxu0 %v85_v13  ;;  %367 = vmatpush.msrb.mxu3 %v2499_v30 }
  0x25   :  { %390 = vmatpush.msra.mxu0 %v2451_v11  ;;  %242 = vmatpush.msrb.mxu1 %v2435_v5 }
  0x26   :  { %476 = vmatpush.msra.mxu3 %v2431_v3  ;;  %322 = vmatpush.msrb.mxu2 %v2443_v8 }
  0x27   :  { %393 = vmatpush.msra.mxu0 %v2455_v12  ;;  %244 = vmatpush.msrb.mxu1 %v2443_v8 }
  0x28   :  { %478 = vmatpush.msra.mxu3 %v2433_v4  ;;  %246 = vmatmul.f32.vlgmr.msrb.gmra.mxu1 %v85_v13 }
  0x29   :  { %396 = vmatpush.msra.mxu0 %v2458_v14  ;;  %416 = vmatpush.msra.mxu1 %v2431_v3 }
  0x2a   :  { %480 = vmatpush.msra.mxu3 %v2435_v5  ;;  %445 = vmatpush.msra.mxu2 %v2463_v15 }
  0x2b   :  { %548 = vmatpush.msrb.mxu0 %v2431_v3  ;;  %418 = vmatpush.msra.mxu1 %v2433_v4 }
  0x2c   :  { %482 = vmatpush.msra.mxu3 %v2443_v8  ;;  %449 = vmatpush.msra.mxu2 %v2466_v16 }
  0x2d   :  { %550 = vmatpush.msrb.mxu0 %v2433_v4  ;;  %420 = vmatpush.msra.mxu1 %v2435_v5 }
  0x2e   :  { %453 = vmatpush.msra.mxu2 %v2469_v18 }
  0x2f   :  { %552 = vmatpush.msrb.mxu0 %v2435_v5  ;;  %422 = vmatpush.msra.mxu1 %v2443_v8 }
  0x30   :  { %457 = vmatpush.msra.mxu2 %v2473_v19 }
  0x31   :  { %581 = vmatpush.msrb.mxu1 %v2484_v24  ;;  %554 = vmatpush.msrb.mxu0 %v2443_v8 }
  0x33   :  { %587 = vmatpush.msrb.mxu1 %v2487_v25 }
  0x35   :  { %593 = vmatpush.msrb.mxu1 %v2496_v28 }
  0x37   :  { %599 = vmatpush.msrb.mxu1 %v2499_v30 }
  0x99   :  { %v91_v31 = vpop.f32.mrf.mxu0 }
  0x9d   :  { %v132_v32 = vpop.f32.mrf.mxu1  ;;  %v189_v35 = vpop.f32.mrf.mxu3 }
  0x9e   :  { %v162_v33 = vpop.f32.mrf.mxu2  ;;  %v133_v34 = vadd.f32 %v132_v32, %v91_v31 }
  0xa0   :  { %v163_v36 = vadd.f32 %v162_v33, %v133_v34 }
  0xa1   :  { %v222_v37 = vpop.f32.mrf.mxu0 }
  0xa2   :  { %v190_v38 = vadd.f32 %v189_v35, %v163_v36 }
  0xa4   :  { %v223_v39 = vadd.f32 %v222_v37, %v190_v38  ;;  %v296_v38 = vld [vmem:[%s295_s19] sm:$0x1]  ;;  %s2380_s19 = smov [#allocation7]  }
  0xa5   :  { %v247_v41 = vpop.f32.mrf.mxu1  ;;  %s2156_s20 = sshll.u32 %s2380_s19, 4  ;;  %s2157_s20 = int_to_ptr.vmem [resolvable:$true] %s2156_s20 }
  0xa6   :  { %v248_v42 = vadd.f32 %v247_v41, %v223_v39 }
  0xa8   :  { %v250_v43 = vadd.f32 %v248_v42, %v60_v40 }
  0xaa   :  { %2217 = vtanh.f32 %v250_v43  ;;  %v2193_v46 = vmul.f32 -1.442695, %v250_v43 }
  0xac   :  { %2219 = vpow2.f32 %v2193_v46 }
  0xb0   :  { %v2218_v44 = vpop.eup %2217 }
  0xb1   :  { %279 = vrot.lane.b32.xlu0 %v2218_v44, %s2377_s16 }
  0xb2   :  { %v2220_v47 = vpop.eup %2219 }
  0xb3   :  { %v254_v48 = vadd.f32 1.0, %v2220_v47 }
  0xb5   :  { %2221 = vrcp.f32 %v254_v48  ;;  %v266_v54 = vand.u32 2147483648, %v254_v48  ;;  %vm260_vm2 = vweird.f32 %v254_v48  ;;  %v264_v55 = vand.u32 2147483647, %v254_v48 }
  0xb7   :  { %v267_v57 = vor.u32 1.1754944e-38, %v266_v54  ;;  %vm265_vm4 = vcmp.eq.f32.partialorder %v264_v55, 8.507059e+37 }
  0xb9   :  { %274 = vrot.lane.b32.xlu0 %v273_v45, %s2378_s17 }
  0xbb   :  { %v2222_v49 = vpop.eup %2221 }
  0xbc   :  { %v256_v50 = vmul.f32 %v2222_v49, %v254_v48  ;;  %vm261_vm1 = vweird.f32 %v2222_v49 }
  0xbd   :  { %vm262_vm3 = vmor %vm260_vm2, %vm261_vm1 }
  0xbe   :  { %v257_v51 = vsub.f32 1.0, %v256_v50 }
  0xc0   :  { %v258_v52 = vmul.f32 %v2222_v49, %v257_v51 }
  0xc2   :  { %v259_v53 = vadd.f32 %v2222_v49, %v258_v52 }
  0xc4   :  { %v263_v56 = vsel %vm262_vm3, %v2222_v49, %v259_v53 }
  0xc5   :  { %v268_v59 = vsel %vm265_vm4, %v267_v57, %v263_v56  ;;  %vm1931_vm4 = vcmask 1042432  }
 0x123   :  { %v280_v58 = vpop.permute.xlu0 %279 }
 0x124   :  { %v282_v60 = vmul.f32 %v280_v58, %v268_v59 }
 0x126   :  { %284 = vrot.lane.b32.xlu1 %v282_v60, %s2378_s17 }
 0x12b   :  { %v275_v61 = vpop.permute.xlu0 %274 }
 0x12c   :  { %v277_v62 = vmul.f32 %v275_v61, %v268_v59 }
 0x198   :  { %v285_v63 = vpop.permute.xlu1 %284 }
 0x199   :  { %v2545_v0 = vadd.f32 %v285_v63, %v277_v62 }
 0x19b   :  { %2223 = vtanh.f32 %v2545_v0 }
 0x1a1   :  { %v2224_v1 = vpop.eup %2223 }
 0x1a2   :  { %290 = vrot.lane.b32.xlu1 %v2224_v1, %s2377_s16 }
 0x214   :  { %v291_v2 = vpop.permute.xlu1 %290 }
 0x215   :  { %v2549_v6 = vmul.f32 %v291_v2, %v268_v59 }
 0x217   :  { %v298_v7 = vperm.slane %v2549_v6, 0 }
 0x219   :  { %299 = vrot.lane.b32.xlu2 %v298_v7, %s2378_s17 }
 0x273   :  { %v300_v9 = vpop.permute.xlu2 %299 }
 0x274   :  { %v301_v13 = vsel %vm61_vm0, %v300_v9, 0 }
 0x275   :  { %v323_v17 = vand.u32 4294901760, %v301_v13 }
 0x277   :  { %v324_v20 = vsub.f32 %v301_v13, %v323_v17  ;;  %369 = vmatmul.f32.vlgmr.msrb.gmra.mxu3 %v323_v17 }
 0x278   :  { %648 = vmatpush.msrb.mxu3 %v2431_v3 }
 0x279   :  { %v325_v21 = vand.u32 4294901760, %v324_v20  ;;  %399 = vmatmul.f32.vlgmr.msra.gmra.mxu0 %v324_v20 }
 0x27a   :  { %650 = vmatpush.msrb.mxu3 %v2433_v4  ;;  %677 = vmatpush.msra.mxu0 %v2463_v15 }
 0x27b   :  { %426 = vmatmul.f32.vlgmr.msra.gmra.mxu1 %v325_v21  ;;  %v326_v22 = vsub.f32 %v324_v20, %v325_v21 }
 0x27c   :  { %652 = vmatpush.msrb.mxu3 %v2435_v5  ;;  %708 = vmatpush.msra.mxu1 %v2431_v3 }
 0x27d   :  { %v327_v23 = vand.u32 4294901760, %v326_v22  ;;  %681 = vmatpush.msra.mxu0 %v2466_v16 }
 0x27e   :  { %654 = vmatpush.msrb.mxu3 %v2443_v8  ;;  %710 = vmatpush.msra.mxu1 %v2433_v4 }
 0x27f   :  { %328 = vmatmul.f32.vlgmr.msrb.gmra.mxu2 %v327_v23  ;;  %484 = vmatmul.f32.vlgmr.msra.gmra.mxu3 %v323_v17 }
 0x280   :  { %619 = vmatpush.msrb.mxu2 %v2447_v10  ;;  %712 = vmatpush.msra.mxu1 %v2435_v5 }
 0x281   :  { %685 = vmatpush.msra.mxu0 %v2469_v18  ;;  %813 = vmatpush.msra.mxu3 %v2484_v24 }
 0x282   :  { %622 = vmatpush.msrb.mxu2 %v2451_v11  ;;  %714 = vmatpush.msra.mxu1 %v2443_v8 }
 0x283   :  { %689 = vmatpush.msra.mxu0 %v2473_v19  ;;  %819 = vmatpush.msra.mxu3 %v2487_v25 }
 0x284   :  { %625 = vmatpush.msrb.mxu2 %v2455_v12 }
 0x285   :  { %825 = vmatpush.msra.mxu3 %v2496_v28 }
 0x286   :  { %628 = vmatpush.msrb.mxu2 %v2458_v14 }
 0x287   :  { %459 = vmatmul.f32.vlgmr.msra.gmra.mxu2 %v323_v17  ;;  %831 = vmatpush.msra.mxu3 %v2499_v30 }
 0x288   :  { %780 = vmatpush.msra.mxu2 %v2431_v3 }
 0x28a   :  { %782 = vmatpush.msra.mxu2 %v2433_v4 }
 0x28c   :  { %784 = vmatpush.msra.mxu2 %v2435_v5 }
 0x28e   :  { %786 = vmatpush.msra.mxu2 %v2443_v8 }
 0x2f6   :  { %v400_v31 = vpop.f32.mrf.mxu0 }
 0x2f8   :  { %v427_v33 = vpop.f32.mrf.mxu1 }
 0x2fa   :  { %v370_v26 = vpop.f32.mrf.mxu3 }
 0x302   :  { %v329_v27 = vpop.f32.mrf.mxu2  ;;  %v485_v37 = vpop.f32.mrf.mxu3 }
 0x303   :  { %v371_v29 = vadd.f32 %v370_v26, %v329_v27 }
 0x305   :  { %v401_v32 = vadd.f32 %v400_v31, %v371_v29 }
 0x307   :  { %v428_v34 = vadd.f32 %v427_v33, %v401_v32 }
 0x30a   :  { %v460_v35 = vpop.f32.mrf.mxu2 }
 0x30b   :  { %v461_v36 = vadd.f32 %v460_v35, %v428_v34  ;;  %v528_v34 = vld [vmem:[%s527_s21] sm:$0x1] }
 0x30d   :  { %v486_v39 = vadd.f32 %v485_v37, %v461_v36 }
 0x30f   :  { %v488_v40 = vadd.f32 %v486_v39, %v296_v38 }
 0x311   :  { %2225 = vtanh.f32 %v488_v40  ;;  %v2195_v42 = vmul.f32 -1.442695, %v488_v40 }
 0x313   :  { %2227 = vpow2.f32 %v2195_v42 }
 0x317   :  { %v2226_v41 = vpop.eup %2225 }
 0x318   :  { %511 = vrot.lane.b32.xlu2 %v2226_v41, %s2377_s16 }
 0x319   :  { %v2228_v43 = vpop.eup %2227 }
 0x31a   :  { %v492_v44 = vadd.f32 1.0, %v2228_v43 }
 0x31c   :  { %2229 = vrcp.f32 %v492_v44  ;;  %v504_v50 = vand.u32 2147483648, %v492_v44  ;;  %vm498_vm6 = vweird.f32 %v492_v44  ;;  %v502_v51 = vand.u32 2147483647, %v492_v44 }
 0x31e   :  { %v505_v53 = vor.u32 1.1754944e-38, %v504_v50  ;;  %vm503_vm8 = vcmp.eq.f32.partialorder %v502_v51, 8.507059e+37 }
 0x322   :  { %v2230_v45 = vpop.eup %2229 }
 0x323   :  { %v494_v46 = vmul.f32 %v2230_v45, %v492_v44  ;;  %vm499_vm5 = vweird.f32 %v2230_v45 }
 0x324   :  { %vm500_vm7 = vmor %vm498_vm6, %vm499_vm5 }
 0x325   :  { %v495_v47 = vsub.f32 1.0, %v494_v46 }
 0x327   :  { %v496_v48 = vmul.f32 %v2230_v45, %v495_v47 }
 0x329   :  { %v497_v49 = vadd.f32 %v2230_v45, %v496_v48 }
 0x32b   :  { %v501_v52 = vsel %vm500_vm7, %v2230_v45, %v497_v49 }
 0x32c   :  { %v506_v55 = vsel %vm503_vm8, %v505_v53, %v501_v52 }
 0x32d   :  { %v509_v57 = vmul.f32 %v506_v55, %v2545_v0 }
 0x372   :  { %v512_v54 = vpop.permute.xlu2 %511 }
 0x373   :  { %v514_v56 = vmul.f32 %v512_v54, %v506_v55 }
 0x375   :  { %516 = vrot.lane.b32.xlu0 %v514_v56, %s2378_s17 }
 0x3e7   :  { %v517_v58 = vpop.permute.xlu0 %516 }
 0x3e8   :  { %v2581_v59 = vadd.f32 %v517_v58, %v509_v57 }
 0x3ea   :  { %2231 = vtanh.f32 %v2581_v59 }
 0x3f0   :  { %v2232_v60 = vpop.eup %2231 }
 0x3f1   :  { %522 = vrot.lane.b32.xlu1 %v2232_v60, %s2377_s16 }
 0x463   :  { %v523_v61 = vpop.permute.xlu1 %522 }
 0x464   :  { %v2585_v62 = vmul.f32 %v523_v61, %v506_v55 }
 0x466   :  { %v530_v63 = vperm.slane %v2585_v62, 0 }
 0x468   :  { %531 = vrot.lane.b32.xlu2 %v530_v63, %s2378_s17  ;;  %v1928_v61 = vsel %vm1927_vm13, %v2549_v6, %v530_v63 }
 0x4c2   :  { %v532_v1 = vpop.permute.xlu2 %531 }
 0x4c3   :  { %v533_v0 = vsel %vm61_vm0, %v532_v1, 0 }
 0x4c4   :  { %v555_v2 = vand.u32 4294901760, %v533_v0 }
 0x4c6   :  { %v556_v7 = vsub.f32 %v533_v0, %v555_v2  ;;  %601 = vmatmul.f32.vlgmr.msrb.gmra.mxu1 %v555_v2 }
 0x4c7   :  { %880 = vmatpush.msrb.mxu1 %v2431_v3 }
 0x4c8   :  { %v557_v9 = vand.u32 4294901760, %v556_v7  ;;  %631 = vmatmul.f32.vlgmr.msrb.gmra.mxu2 %v556_v7 }
 0x4c9   :  { %882 = vmatpush.msrb.mxu1 %v2433_v4  ;;  %909 = vmatpush.msrb.mxu2 %v2463_v15 }
 0x4ca   :  { %v558_v13 = vsub.f32 %v556_v7, %v557_v9  ;;  %658 = vmatmul.f32.vlgmr.msrb.gmra.mxu3 %v557_v9 }
 0x4cb   :  { %884 = vmatpush.msrb.mxu1 %v2435_v5  ;;  %940 = vmatpush.msrb.mxu3 %v2431_v3 }
 0x4cc   :  { %v559_v17 = vand.u32 4294901760, %v558_v13  ;;  %913 = vmatpush.msrb.mxu2 %v2466_v16 }
 0x4cd   :  { %886 = vmatpush.msrb.mxu1 %v2443_v8  ;;  %942 = vmatpush.msrb.mxu3 %v2433_v4 }
 0x4ce   :  { %560 = vmatmul.f32.vlgmr.msrb.gmra.mxu0 %v559_v17  ;;  %716 = vmatmul.f32.vlgmr.msra.gmra.mxu1 %v555_v2 }
 0x4cf   :  { %851 = vmatpush.msrb.mxu0 %v2447_v10  ;;  %944 = vmatpush.msrb.mxu3 %v2435_v5 }
 0x4d0   :  { %917 = vmatpush.msrb.mxu2 %v2469_v18  ;;  %1045 = vmatpush.msra.mxu1 %v2484_v24 }
 0x4d1   :  { %854 = vmatpush.msrb.mxu0 %v2451_v11  ;;  %946 = vmatpush.msrb.mxu3 %v2443_v8 }
 0x4d2   :  { %921 = vmatpush.msrb.mxu2 %v2473_v19  ;;  %1051 = vmatpush.msra.mxu1 %v2487_v25 }
 0x4d3   :  { %857 = vmatpush.msrb.mxu0 %v2455_v12 }
 0x4d4   :  { %1057 = vmatpush.msra.mxu1 %v2496_v28 }
 0x4d5   :  { %860 = vmatpush.msrb.mxu0 %v2458_v14 }
 0x4d6   :  { %691 = vmatmul.f32.vlgmr.msra.gmra.mxu0 %v555_v2  ;;  %1063 = vmatpush.msra.mxu1 %v2499_v30 }
 0x4d7   :  { %1012 = vmatpush.msra.mxu0 %v2431_v3 }
 0x4d9   :  { %1014 = vmatpush.msra.mxu0 %v2433_v4 }
 0x4db   :  { %1016 = vmatpush.msra.mxu0 %v2435_v5 }
 0x4dd   :  { %1018 = vmatpush.msra.mxu0 %v2443_v8 }
 0x543   :  { %v602_v20 = vpop.f32.mrf.mxu1 }
 0x54b   :  { %v561_v21 = vpop.f32.mrf.mxu0  ;;  %v632_v23 = vpop.f32.mrf.mxu2 }
 0x54c   :  { %v603_v22 = vadd.f32 %v602_v20, %v561_v21  ;;  %v717_v33 = vpop.f32.mrf.mxu1 }
 0x54d   :  { %v659_v27 = vpop.f32.mrf.mxu3 }
 0x54e   :  { %v633_v26 = vadd.f32 %v632_v23, %v603_v22 }
 0x550   :  { %v660_v29 = vadd.f32 %v659_v27, %v633_v26 }
 0x553   :  { %v692_v31 = vpop.f32.mrf.mxu0 }
 0x554   :  { %v693_v32 = vadd.f32 %v692_v31, %v660_v29  ;;  %v760_v31 = vld [vmem:[%s759_s23] sm:$0x1] }
 0x556   :  { %v718_v35 = vadd.f32 %v717_v33, %v693_v32 }
 0x558   :  { %v720_v36 = vadd.f32 %v718_v35, %v528_v34 }
 0x55a   :  { %2233 = vtanh.f32 %v720_v36  ;;  %v2197_v38 = vmul.f32 -1.442695, %v720_v36 }
 0x55c   :  { %2235 = vpow2.f32 %v2197_v38 }
 0x560   :  { %v2234_v37 = vpop.eup %2233 }
 0x561   :  { %743 = vrot.lane.b32.xlu0 %v2234_v37, %s2377_s16 }
 0x562   :  { %v2236_v39 = vpop.eup %2235 }
 0x563   :  { %v724_v40 = vadd.f32 1.0, %v2236_v39 }
 0x565   :  { %2237 = vrcp.f32 %v724_v40  ;;  %v736_v46 = vand.u32 2147483648, %v724_v40  ;;  %vm730_vm10 = vweird.f32 %v724_v40  ;;  %v734_v47 = vand.u32 2147483647, %v724_v40 }
 0x567   :  { %v737_v49 = vor.u32 1.1754944e-38, %v736_v46  ;;  %vm735_vm12 = vcmp.eq.f32.partialorder %v734_v47, 8.507059e+37 }
 0x56b   :  { %v2238_v41 = vpop.eup %2237 }
 0x56c   :  { %v726_v42 = vmul.f32 %v2238_v41, %v724_v40  ;;  %vm731_vm9 = vweird.f32 %v2238_v41 }
 0x56d   :  { %vm732_vm11 = vmor %vm730_vm10, %vm731_vm9  ;;  %vm1933_vm9 = vcmask 1043456  }
 0x56e   :  { %v727_v43 = vsub.f32 1.0, %v726_v42 }
 0x570   :  { %v728_v44 = vmul.f32 %v2238_v41, %v727_v43 }
 0x572   :  { %v729_v45 = vadd.f32 %v2238_v41, %v728_v44 }
 0x574   :  { %v733_v48 = vsel %vm732_vm11, %v2238_v41, %v729_v45 }
 0x575   :  { %v738_v51 = vsel %vm735_vm12, %v737_v49, %v733_v48 }
 0x576   :  { %v741_v53 = vmul.f32 %v738_v51, %v2581_v59 }
 0x5d3   :  { %v744_v50 = vpop.permute.xlu0 %743 }
 0x5d4   :  { %v746_v52 = vmul.f32 %v744_v50, %v738_v51 }
 0x5d6   :  { %748 = vrot.lane.b32.xlu1 %v746_v52, %s2378_s17 }
 0x648   :  { %v749_v54 = vpop.permute.xlu1 %748 }
 0x649   :  { %v2619_v55 = vadd.f32 %v749_v54, %v741_v53 }
 0x64b   :  { %2239 = vtanh.f32 %v2619_v55 }
 0x651   :  { %v2240_v56 = vpop.eup %2239 }
 0x652   :  { %754 = vrot.lane.b32.xlu2 %v2240_v56, %s2377_s16 }
 0x6ac   :  { %v755_v57 = vpop.permute.xlu2 %754 }
 0x6ad   :  { %v757_v58 = vmul.f32 %v755_v57, %v738_v51 }
 0x6af   :  { %v762_v60 = vperm.slane %v757_v58, 0 }
 0x6b1   :  { %763 = vrot.lane.b32.xlu0 %v762_v60, %s2378_s17  ;;  %v2628_v59 = vsel %vm1929_vm14, %v1928_v61, %v762_v60 }
 0x723   :  { %v764_v1 = vpop.permute.xlu0 %763 }
 0x724   :  { %v765_v0 = vsel %vm61_vm0, %v764_v1, 0 }
 0x725   :  { %v787_v2 = vand.u32 4294901760, %v765_v0 }
 0x727   :  { %v788_v7 = vsub.f32 %v765_v0, %v787_v2  ;;  %833 = vmatmul.f32.vlgmr.msra.gmra.mxu3 %v787_v2 }
 0x728   :  { %1112 = vmatpush.msra.mxu3 %v2431_v3 }
 0x729   :  { %v789_v9 = vand.u32 4294901760, %v788_v7  ;;  %863 = vmatmul.f32.vlgmr.msrb.gmra.mxu0 %v788_v7 }
 0x72a   :  { %1114 = vmatpush.msra.mxu3 %v2433_v4  ;;  %1141 = vmatpush.msrb.mxu0 %v2463_v15 }
 0x72b   :  { %v790_v62 = vsub.f32 %v788_v7, %v789_v9  ;;  %890 = vmatmul.f32.vlgmr.msrb.gmra.mxu1 %v789_v9 }
 0x72c   :  { %1116 = vmatpush.msra.mxu3 %v2435_v5  ;;  %1172 = vmatpush.msrb.mxu1 %v2431_v3 }
 0x72d   :  { %v791_v6 = vand.u32 4294901760, %v790_v62  ;;  %1145 = vmatpush.msrb.mxu0 %v2466_v16 }
 0x72e   :  { %1118 = vmatpush.msra.mxu3 %v2443_v8  ;;  %1174 = vmatpush.msrb.mxu1 %v2433_v4 }
 0x72f   :  { %792 = vmatmul.f32.vlgmr.msra.gmra.mxu2 %v791_v6  ;;  %948 = vmatmul.f32.vlgmr.msrb.gmra.mxu3 %v787_v2 }
 0x730   :  { %1083 = vmatpush.msra.mxu2 %v2447_v10  ;;  %1176 = vmatpush.msrb.mxu1 %v2435_v5 }
 0x731   :  { %1149 = vmatpush.msrb.mxu0 %v2469_v18  ;;  %1277 = vmatpush.msrb.mxu3 %v2484_v24 }
 0x732   :  { %1086 = vmatpush.msra.mxu2 %v2451_v11  ;;  %1178 = vmatpush.msrb.mxu1 %v2443_v8 }
 0x733   :  { %1153 = vmatpush.msrb.mxu0 %v2473_v19  ;;  %1283 = vmatpush.msrb.mxu3 %v2487_v25 }
 0x734   :  { %1089 = vmatpush.msra.mxu2 %v2455_v12 }
 0x735   :  { %1289 = vmatpush.msrb.mxu3 %v2496_v28 }
 0x736   :  { %1092 = vmatpush.msra.mxu2 %v2458_v14 }
 0x737   :  { %923 = vmatmul.f32.vlgmr.msrb.gmra.mxu2 %v787_v2  ;;  %1295 = vmatpush.msrb.mxu3 %v2499_v30 }
 0x738   :  { %1244 = vmatpush.msrb.mxu2 %v2431_v3 }
 0x73a   :  { %1246 = vmatpush.msrb.mxu2 %v2433_v4 }
 0x73c   :  { %1248 = vmatpush.msrb.mxu2 %v2435_v5 }
 0x73e   :  { %1250 = vmatpush.msrb.mxu2 %v2443_v8 }
 0x7a6   :  { %v864_v20 = vpop.f32.mrf.mxu0 }
 0x7a8   :  { %v891_v22 = vpop.f32.mrf.mxu1 }
 0x7aa   :  { %v834_v63 = vpop.f32.mrf.mxu3 }
 0x7b2   :  { %v793_v13 = vpop.f32.mrf.mxu2  ;;  %v949_v29 = vpop.f32.mrf.mxu3 }
 0x7b3   :  { %v835_v17 = vadd.f32 %v834_v63, %v793_v13 }
 0x7b5   :  { %v865_v21 = vadd.f32 %v864_v20, %v835_v17 }
 0x7b7   :  { %v892_v23 = vadd.f32 %v891_v22, %v865_v21 }
 0x7ba   :  { %v924_v26 = vpop.f32.mrf.mxu2 }
 0x7bb   :  { %v925_v27 = vadd.f32 %v924_v26, %v892_v23  ;;  %v992_v23 = vld [vmem:[%s991_s25] sm:$0x1] }
 0x7bd   :  { %v950_v32 = vadd.f32 %v949_v29, %v925_v27 }
 0x7bf   :  { %v952_v33 = vadd.f32 %v950_v32, %v760_v31 }
 0x7c1   :  { %2241 = vtanh.f32 %v952_v33  ;;  %v2199_v35 = vmul.f32 -1.442695, %v952_v33 }
 0x7c3   :  { %2243 = vpow2.f32 %v2199_v35 }
 0x7c7   :  { %v2242_v34 = vpop.eup %2241 }
 0x7c8   :  { %975 = vrot.lane.b32.xlu1 %v2242_v34, %s2377_s16 }
 0x7c9   :  { %v2244_v36 = vpop.eup %2243 }
 0x7ca   :  { %v956_v37 = vadd.f32 1.0, %v2244_v36 }
 0x7cc   :  { %2245 = vrcp.f32 %v956_v37  ;;  %v968_v43 = vand.u32 2147483648, %v956_v37  ;;  %vm962_vm1 = vweird.f32 %v956_v37  ;;  %v966_v44 = vand.u32 2147483647, %v956_v37 }
 0x7ce   :  { %v969_v46 = vor.u32 1.1754944e-38, %v968_v43  ;;  %vm967_vm3 = vcmp.eq.f32.partialorder %v966_v44, 8.507059e+37 }
 0x7d2   :  { %v2246_v38 = vpop.eup %2245 }
 0x7d3   :  { %v958_v39 = vmul.f32 %v2246_v38, %v956_v37  ;;  %vm963_vm15 = vweird.f32 %v2246_v38 }
 0x7d4   :  { %vm964_vm2 = vmor %vm962_vm1, %vm963_vm15  ;;  %vm1935_vm15 = vcmask 1044480  }
 0x7d5   :  { %v959_v40 = vsub.f32 1.0, %v958_v39 }
 0x7d7   :  { %v960_v41 = vmul.f32 %v2246_v38, %v959_v40 }
 0x7d9   :  { %v961_v42 = vadd.f32 %v2246_v38, %v960_v41 }
 0x7db   :  { %v965_v45 = vsel %vm964_vm2, %v2246_v38, %v961_v42 }
 0x7dc   :  { %v970_v48 = vsel %vm967_vm3, %v969_v46, %v965_v45 }
 0x7dd   :  { %v973_v50 = vmul.f32 %v970_v48, %v2619_v55 }
 0x83a   :  { %v976_v47 = vpop.permute.xlu1 %975 }
 0x83b   :  { %v978_v49 = vmul.f32 %v976_v47, %v970_v48 }
 0x83d   :  { %980 = vrot.lane.b32.xlu2 %v978_v49, %s2378_s17 }
 0x897   :  { %v981_v51 = vpop.permute.xlu2 %980 }
 0x898   :  { %v2658_v52 = vadd.f32 %v981_v51, %v973_v50 }
 0x89a   :  { %2247 = vtanh.f32 %v2658_v52 }
 0x8a0   :  { %v2248_v53 = vpop.eup %2247 }
 0x8a1   :  { %986 = vrot.lane.b32.xlu0 %v2248_v53, %s2377_s16 }
 0x913   :  { %v987_v54 = vpop.permute.xlu0 %986 }
 0x914   :  { %v989_v56 = vmul.f32 %v987_v54, %v970_v48 }
 0x916   :  { %v994_v57 = vperm.slane %v989_v56, 0 }
 0x918   :  { %995 = vrot.lane.b32.xlu1 %v994_v57, %s2378_s17  ;;  %v2664_v58 = vsel %vm1931_vm4, %v2628_v59, %v994_v57 }
 0x98a   :  { %v996_v60 = vpop.permute.xlu1 %995 }
 0x98b   :  { %v997_v55 = vsel %vm61_vm0, %v996_v60, 0 }
 0x98c   :  { %v1019_v61 = vand.u32 4294901760, %v997_v55 }
 0x98e   :  { %v1020_v1 = vsub.f32 %v997_v55, %v1019_v61  ;;  %1065 = vmatmul.f32.vlgmr.msra.gmra.mxu1 %v1019_v61 }
 0x98f   :  { %1344 = vmatpush.msra.mxu1 %v2431_v3 }
 0x990   :  { %v1021_v0 = vand.u32 4294901760, %v1020_v1  ;;  %1095 = vmatmul.f32.vlgmr.msra.gmra.mxu2 %v1020_v1 }
 0x991   :  { %1346 = vmatpush.msra.mxu1 %v2433_v4  ;;  %1373 = vmatpush.msra.mxu2 %v2463_v15 }
 0x992   :  { %v1022_v2 = vsub.f32 %v1020_v1, %v1021_v0  ;;  %1122 = vmatmul.f32.vlgmr.msra.gmra.mxu3 %v1021_v0 }
 0x993   :  { %1348 = vmatpush.msra.mxu1 %v2435_v5  ;;  %1404 = vmatpush.msra.mxu3 %v2431_v3 }
 0x994   :  { %v1023_v59 = vand.u32 4294901760, %v1022_v2  ;;  %1377 = vmatpush.msra.mxu2 %v2466_v16 }
 0x995   :  { %1350 = vmatpush.msra.mxu1 %v2443_v8  ;;  %1406 = vmatpush.msra.mxu3 %v2433_v4 }
 0x996   :  { %1024 = vmatmul.f32.vlgmr.msra.gmra.mxu0 %v1023_v59  ;;  %1180 = vmatmul.f32.vlgmr.msrb.gmra.mxu1 %v1019_v61 }
 0x997   :  { %1315 = vmatpush.msra.mxu0 %v2447_v10  ;;  %1408 = vmatpush.msra.mxu3 %v2435_v5 }
 0x998   :  { %1381 = vmatpush.msra.mxu2 %v2469_v18  ;;  %1509 = vmatpush.msrb.mxu1 %v2484_v24 }
 0x999   :  { %1318 = vmatpush.msra.mxu0 %v2451_v11  ;;  %1410 = vmatpush.msra.mxu3 %v2443_v8 }
 0x99a   :  { %1385 = vmatpush.msra.mxu2 %v2473_v19  ;;  %1515 = vmatpush.msrb.mxu1 %v2487_v25 }
 0x99b   :  { %1321 = vmatpush.msra.mxu0 %v2455_v12 }
 0x99c   :  { %1521 = vmatpush.msrb.mxu1 %v2496_v28 }
 0x99d   :  { %1324 = vmatpush.msra.mxu0 %v2458_v14 }
 0x99e   :  { %1155 = vmatmul.f32.vlgmr.msrb.gmra.mxu0 %v1019_v61  ;;  %1527 = vmatpush.msrb.mxu1 %v2499_v30 }
 0x99f   :  { %1476 = vmatpush.msrb.mxu0 %v2431_v3 }
 0x9a1   :  { %1478 = vmatpush.msrb.mxu0 %v2433_v4 }
 0x9a3   :  { %1480 = vmatpush.msrb.mxu0 %v2435_v5 }
 0x9a5   :  { %1482 = vmatpush.msrb.mxu0 %v2443_v8 }
 0xa0b   :  { %v1066_v7 = vpop.f32.mrf.mxu1 }
 0xa13   :  { %v1025_v9 = vpop.f32.mrf.mxu0  ;;  %v1096_v6 = vpop.f32.mrf.mxu2 }
 0xa14   :  { %v1067_v62 = vadd.f32 %v1066_v7, %v1025_v9  ;;  %v1181_v22 = vpop.f32.mrf.mxu1 }
 0xa15   :  { %v1123_v13 = vpop.f32.mrf.mxu3 }
 0xa16   :  { %v1097_v63 = vadd.f32 %v1096_v6, %v1067_v62 }
 0xa18   :  { %v1124_v17 = vadd.f32 %v1123_v13, %v1097_v63 }
 0xa1b   :  { %v1156_v20 = vpop.f32.mrf.mxu0 }
 0xa1c   :  { %v1157_v21 = vadd.f32 %v1156_v20, %v1124_v17 }
 0xa1e   :  { %v1182_v26 = vadd.f32 %v1181_v22, %v1157_v21 }
 0xa20   :  { %v1184_v27 = vadd.f32 %v1182_v26, %v992_v23 }
 0xa22   :  { %2249 = vtanh.f32 %v1184_v27  ;;  %v2201_v31 = vmul.f32 -1.442695, %v1184_v27 }
 0xa24   :  { %2251 = vpow2.f32 %v2201_v31 }
 0xa28   :  { %v2250_v29 = vpop.eup %2249 }
 0xa29   :  { %1207 = vrot.lane.b32.xlu2 %v2250_v29, %s2377_s16 }
 0xa2a   :  { %v2252_v32 = vpop.eup %2251 }
 0xa2b   :  { %v1188_v33 = vadd.f32 1.0, %v2252_v32 }
 0xa2d   :  { %2253 = vrcp.f32 %v1188_v33  ;;  %v1200_v39 = vand.u32 2147483648, %v1188_v33  ;;  %vm1194_vm6 = vweird.f32 %v1188_v33  ;;  %v1198_v40 = vand.u32 2147483647, %v1188_v33 }
 0xa2f   :  { %v1201_v42 = vor.u32 1.1754944e-38, %v1200_v39  ;;  %vm1199_vm8 = vcmp.eq.f32.partialorder %v1198_v40, 8.507059e+37 }
 0xa33   :  { %v2254_v34 = vpop.eup %2253 }
 0xa34   :  { %v1190_v35 = vmul.f32 %v2254_v34, %v1188_v33  ;;  %vm1195_vm5 = vweird.f32 %v2254_v34 }
 0xa35   :  { %vm1196_vm7 = vmor %vm1194_vm6, %vm1195_vm5  ;;  %vm1937_vm5 = vcmask 1045504  }
 0xa36   :  { %v1191_v36 = vsub.f32 1.0, %v1190_v35 }
 0xa38   :  { %v1192_v37 = vmul.f32 %v2254_v34, %v1191_v36 }
 0xa3a   :  { %v1193_v38 = vadd.f32 %v2254_v34, %v1192_v37 }
 0xa3c   :  { %v1197_v41 = vsel %vm1196_vm7, %v2254_v34, %v1193_v38 }
 0xa3d   :  { %v1202_v44 = vsel %vm1199_vm8, %v1201_v42, %v1197_v41 }
 0xa3e   :  { %v1205_v46 = vmul.f32 %v1202_v44, %v2658_v52 }
 0xa83   :  { %v1208_v43 = vpop.permute.xlu2 %1207 }
 0xa84   :  { %v1210_v45 = vmul.f32 %v1208_v43, %v1202_v44 }
 0xa86   :  { %1212 = vrot.lane.b32.xlu0 %v1210_v45, %s2378_s17 }
 0xaf8   :  { %v1213_v47 = vpop.permute.xlu0 %1212 }
 0xaf9   :  { %v2694_v48 = vadd.f32 %v1213_v47, %v1205_v46 }
 0xafb   :  { %2255 = vtanh.f32 %v2694_v48 }
 0xb01   :  { %v2256_v49 = vpop.eup %2255 }
 0xb02   :  { %1218 = vrot.lane.b32.xlu1 %v2256_v49, %s2377_s16 }
 0xb74   :  { %v1219_v50 = vpop.permute.xlu1 %1218 }
 0xb75   :  { %v1221_v51 = vmul.f32 %v1219_v50, %v1202_v44 }
 0xb77   :  { %v1226_v53 = vperm.slane %v1221_v51, 0 }
 0xb79   :  { %1227 = vrot.lane.b32.xlu2 %v1226_v53, %s2378_s17  ;;  %v2700_v54 = vsel %vm1933_vm9, %v2664_v58, %v1226_v53 }
 0xbd3   :  { %v1228_v56 = vpop.permute.xlu2 %1227 }
 0xbd4   :  { %v1229_v52 = vsel %vm61_vm0, %v1228_v56, 0 }
 0xbd5   :  { %v1251_v57 = vand.u32 4294901760, %v1229_v52 }
 0xbd7   :  { %v1252_v60 = vsub.f32 %v1229_v52, %v1251_v57  ;;  %1297 = vmatmul.f32.vlgmr.msrb.gmra.mxu3 %v1251_v57 }
 0xbd8   :  { %1576 = vmatpush.msrb.mxu3 %v2431_v3 }
 0xbd9   :  { %v1253_v55 = vand.u32 4294901760, %v1252_v60  ;;  %1327 = vmatmul.f32.vlgmr.msra.gmra.mxu0 %v1252_v60 }
 0xbda   :  { %1578 = vmatpush.msrb.mxu3 %v2433_v4  ;;  %1605 = vmatpush.msra.mxu0 %v2463_v15 }
 0xbdb   :  { %v1254_v61 = vsub.f32 %v1252_v60, %v1253_v55  ;;  %1354 = vmatmul.f32.vlgmr.msra.gmra.mxu1 %v1253_v55 }
 0xbdc   :  { %1580 = vmatpush.msrb.mxu3 %v2435_v5  ;;  %1636 = vmatpush.msra.mxu1 %v2431_v3 }
 0xbdd   :  { %v1255_v58 = vand.u32 4294901760, %v1254_v61  ;;  %1609 = vmatpush.msra.mxu0 %v2466_v16 }
 0xbde   :  { %1582 = vmatpush.msrb.mxu3 %v2443_v8  ;;  %1638 = vmatpush.msra.mxu1 %v2433_v4 }
 0xbdf   :  { %1256 = vmatmul.f32.vlgmr.msrb.gmra.mxu2 %v1255_v58  ;;  %1412 = vmatmul.f32.vlgmr.msra.gmra.mxu3 %v1251_v57 }
 0xbe0   :  { %1547 = vmatpush.msrb.mxu2 %v2447_v10  ;;  %1640 = vmatpush.msra.mxu1 %v2435_v5 }
 0xbe1   :  { %1613 = vmatpush.msra.mxu0 %v2469_v18  ;;  %1741 = vmatpush.msra.mxu3 %v2484_v24 }
 0xbe2   :  { %1550 = vmatpush.msrb.mxu2 %v2451_v11  ;;  %1642 = vmatpush.msra.mxu1 %v2443_v8 }
 0xbe3   :  { %1617 = vmatpush.msra.mxu0 %v2473_v19  ;;  %1747 = vmatpush.msra.mxu3 %v2487_v25 }
 0xbe4   :  { %1553 = vmatpush.msrb.mxu2 %v2455_v12 }
 0xbe5   :  { %1753 = vmatpush.msra.mxu3 %v2496_v28 }
 0xbe6   :  { %1556 = vmatpush.msrb.mxu2 %v2458_v14 }
 0xbe7   :  { %1387 = vmatmul.f32.vlgmr.msra.gmra.mxu2 %v1251_v57  ;;  %1759 = vmatpush.msra.mxu3 %v2499_v30  ;;  %v1224_v30 = vld [vmem:[%s1223_s27] sm:$0x1] }
 0xbe8   :  { %1708 = vmatpush.msra.mxu2 %v2431_v3 }
 0xbea   :  { %1710 = vmatpush.msra.mxu2 %v2433_v4 }
 0xbec   :  { %1712 = vmatpush.msra.mxu2 %v2435_v5 }
 0xbee   :  { %1714 = vmatpush.msra.mxu2 %v2443_v8 }
 0xc56   :  { %v1328_v0 = vpop.f32.mrf.mxu0 }
 0xc58   :  { %v1355_v28 = vpop.f32.mrf.mxu1 }
 0xc5a   :  { %v1298_v24 = vpop.f32.mrf.mxu3 }
 0xc62   :  { %v1257_v25 = vpop.f32.mrf.mxu2  ;;  %v1413_v62 = vpop.f32.mrf.mxu3 }
 0xc63   :  { %v1299_v1 = vadd.f32 %v1298_v24, %v1257_v25 }
 0xc65   :  { %v1329_v2 = vadd.f32 %v1328_v0, %v1299_v1 }
 0xc67   :  { %v1356_v59 = vadd.f32 %v1355_v28, %v1329_v2 }
 0xc6a   :  { %v1388_v7 = vpop.f32.mrf.mxu2 }
 0xc6b   :  { %v1389_v9 = vadd.f32 %v1388_v7, %v1356_v59 }
 0xc6d   :  { %v1414_v6 = vadd.f32 %v1413_v62, %v1389_v9 }
 0xc6f   :  { %v1416_v63 = vadd.f32 %v1414_v6, %v1224_v30 }
 0xc71   :  { %2257 = vtanh.f32 %v1416_v63  ;;  %v2203_v17 = vmul.f32 -1.442695, %v1416_v63 }
 0xc73   :  { %2259 = vpow2.f32 %v2203_v17 }
 0xc77   :  { %v2258_v13 = vpop.eup %2257 }
 0xc78   :  { %1439 = vrot.lane.b32.xlu0 %v2258_v13, %s2377_s16 }
 0xc79   :  { %v2260_v20 = vpop.eup %2259 }
 0xc7a   :  { %v1420_v21 = vadd.f32 1.0, %v2260_v20 }
 0xc7c   :  { %2261 = vrcp.f32 %v1420_v21  ;;  %v1432_v31 = vand.u32 2147483648, %v1420_v21  ;;  %vm1426_vm11 = vweird.f32 %v1420_v21  ;;  %v1430_v32 = vand.u32 2147483647, %v1420_v21 }
 0xc7e   :  { %v1433_v34 = vor.u32 1.1754944e-38, %v1432_v31  ;;  %vm1431_vm14 = vcmp.eq.f32.partialorder %v1430_v32, 8.507059e+37 }
 0xc82   :  { %v2262_v22 = vpop.eup %2261 }
 0xc83   :  { %v1422_v23 = vmul.f32 %v2262_v22, %v1420_v21  ;;  %vm1427_vm10 = vweird.f32 %v2262_v22 }
 0xc84   :  { %vm1428_vm12 = vmor %vm1426_vm11, %vm1427_vm10  ;;  %vm1939_vm10 = vcmask 1046528  }
 0xc85   :  { %v1423_v26 = vsub.f32 1.0, %v1422_v23 }
 0xc87   :  { %v1424_v27 = vmul.f32 %v2262_v22, %v1423_v26 }
 0xc89   :  { %v1425_v29 = vadd.f32 %v2262_v22, %v1424_v27 }
 0xc8b   :  { %v1429_v33 = vsel %vm1428_vm12, %v2262_v22, %v1425_v29 }
 0xc8c   :  { %v1434_v36 = vsel %vm1431_vm14, %v1433_v34, %v1429_v33 }
 0xc8d   :  { %v1437_v38 = vmul.f32 %v1434_v36, %v2694_v48 }
 0xcea   :  { %v1440_v35 = vpop.permute.xlu0 %1439 }
 0xceb   :  { %v1442_v37 = vmul.f32 %v1440_v35, %v1434_v36 }
 0xced   :  { %1444 = vrot.lane.b32.xlu1 %v1442_v37, %s2378_s17 }
 0xd5f   :  { %v1445_v39 = vpop.permute.xlu1 %1444 }
 0xd60   :  { %v2730_v40 = vadd.f32 %v1445_v39, %v1437_v38 }
 0xd62   :  { %2263 = vtanh.f32 %v2730_v40 }
 0xd68   :  { %v2264_v41 = vpop.eup %2263 }
 0xd69   :  { %1450 = vrot.lane.b32.xlu2 %v2264_v41, %s2377_s16 }
 0xdc3   :  { %v1451_v42 = vpop.permute.xlu2 %1450 }
 0xdc4   :  { %v1453_v43 = vmul.f32 %v1451_v42, %v1434_v36 }
 0xdc6   :  { %v1458_v44 = vperm.slane %v1453_v43, 0  ;;  %v1688_v43 = vld [vmem:[%s1687_s7] sm:$0x1] }
 0xdc8   :  { %1459 = vrot.lane.b32.xlu0 %v1458_v44, %s2378_s17  ;;  %v2736_v45 = vsel %vm1935_vm15, %v2700_v54, %v1458_v44 }
 0xe3a   :  { %v1460_v46 = vpop.permute.xlu0 %1459 }
 0xe3b   :  { %v1461_v47 = vsel %vm61_vm0, %v1460_v46, 0 }
 0xe3c   :  { %v1483_v48 = vand.u32 4294901760, %v1461_v47 }
 0xe3e   :  { %v1484_v49 = vsub.f32 %v1461_v47, %v1483_v48  ;;  %1529 = vmatmul.f32.vlgmr.msrb.gmra.mxu1 %v1483_v48 }
 0xe3f   :  { %1808 = vmatpush.msrb.mxu1 %v2431_v3 }
 0xe40   :  { %v1485_v50 = vand.u32 4294901760, %v1484_v49  ;;  %1559 = vmatmul.f32.vlgmr.msrb.gmra.mxu2 %v1484_v49 }
 0xe41   :  { %1810 = vmatpush.msrb.mxu1 %v2433_v4  ;;  %1837 = vmatpush.msrb.mxu2 %v2463_v15 }
 0xe42   :  { %v1486_v51 = vsub.f32 %v1484_v49, %v1485_v50  ;;  %1586 = vmatmul.f32.vlgmr.msrb.gmra.mxu3 %v1485_v50 }
 0xe43   :  { %1812 = vmatpush.msrb.mxu1 %v2435_v5  ;;  %1868 = vmatpush.msrb.mxu3 %v2431_v3 }
 0xe44   :  { %v1487_v53 = vand.u32 4294901760, %v1486_v51  ;;  %1841 = vmatpush.msrb.mxu2 %v2466_v16 }
 0xe45   :  { %1814 = vmatpush.msrb.mxu1 %v2443_v8  ;;  %1870 = vmatpush.msrb.mxu3 %v2433_v4 }
 0xe46   :  { %1488 = vmatmul.f32.vlgmr.msrb.gmra.mxu0 %v1487_v53  ;;  %1644 = vmatmul.f32.vlgmr.msra.gmra.mxu1 %v1483_v48 }
 0xe47   :  { %1779 = vmatpush.msrb.mxu0 %v2447_v10  ;;  %1872 = vmatpush.msrb.mxu3 %v2435_v5 }
 0xe48   :  { %1845 = vmatpush.msrb.mxu2 %v2469_v18 }
 0xe49   :  { %1782 = vmatpush.msrb.mxu0 %v2451_v11  ;;  %1874 = vmatpush.msrb.mxu3 %v2443_v8  ;;  %v1456_v8 = vld [vmem:[%s1455_s29] sm:$0x1] }
 0xe4a   :  { %1849 = vmatpush.msrb.mxu2 %v2473_v19 }
 0xe4b   :  { %1785 = vmatpush.msrb.mxu0 %v2455_v12 }
 0xe4d   :  { %1788 = vmatpush.msrb.mxu0 %v2458_v14 }
 0xe4e   :  { %1619 = vmatmul.f32.vlgmr.msra.gmra.mxu0 %v1483_v48 }
 0xebb   :  { %v1530_v3 = vpop.f32.mrf.mxu1 }
 0xec3   :  { %v1489_v4 = vpop.f32.mrf.mxu0  ;;  %v1560_v10 = vpop.f32.mrf.mxu2 }
 0xec4   :  { %v1531_v15 = vadd.f32 %v1530_v3, %v1489_v4  ;;  %v1645_v11 = vpop.f32.mrf.mxu1 }
 0xec5   :  { %v1587_v5 = vpop.f32.mrf.mxu3 }
 0xec6   :  { %v1561_v16 = vadd.f32 %v1560_v10, %v1531_v15 }
 0xec8   :  { %v1588_v54 = vadd.f32 %v1587_v5, %v1561_v16 }
 0xecb   :  { %v1620_v18 = vpop.f32.mrf.mxu0 }
 0xecc   :  { %v1621_v56 = vadd.f32 %v1620_v18, %v1588_v54 }
 0xece   :  { %v1646_v52 = vadd.f32 %v1645_v11, %v1621_v56 }
 0xed0   :  { %v1648_v19 = vadd.f32 %v1646_v52, %v1456_v8 }
 0xed2   :  { %2265 = vtanh.f32 %v1648_v19  ;;  %v2205_v14 = vmul.f32 -1.442695, %v1648_v19 }
 0xed4   :  { %2267 = vpow2.f32 %v2205_v14  ;;  %v1944_v14 = vld [vmem:[%s2801_s3 + $0x18] sm:$0xff] }
 0xed8   :  { %v2266_v12 = vpop.eup %2265 }
 0xed9   :  { %1671 = vrot.lane.b32.xlu1 %v2266_v12, %s2377_s16 }
 0xeda   :  { %v2268_v57 = vpop.eup %2267 }
 0xedb   :  { %v1652_v60 = vadd.f32 1.0, %v2268_v57  ;;  %v1943_v57 = vld [vmem:[%s2801_s3 + $0x10] sm:$0xff] }
 0xedd   :  { %2269 = vrcp.f32 %v1652_v60  ;;  %v1664_v1 = vand.u32 2147483648, %v1652_v60  ;;  %vm1658_vm2 = vweird.f32 %v1652_v60  ;;  %v1662_v0 = vand.u32 2147483647, %v1652_v60 }
 0xedf   :  { %v1665_v28 = vor.u32 1.1754944e-38, %v1664_v1  ;;  %vm1663_vm4 = vcmp.eq.f32.partialorder %v1662_v0, 8.507059e+37 }
 0xee3   :  { %v2270_v55 = vpop.eup %2269 }
 0xee4   :  { %v1654_v61 = vmul.f32 %v2270_v55, %v1652_v60  ;;  %vm1659_vm1 = vweird.f32 %v2270_v55  ;;  %v1964_v60 = vand.u32 4294901760, %v1944_v14 }
 0xee5   :  { %vm1660_vm3 = vmor %vm1658_vm2, %vm1659_vm1 }
 0xee6   :  { %v1655_v58 = vsub.f32 1.0, %v1654_v61  ;;  %v1994_v61 = vsub.f32 %v1944_v14, %v1964_v60  ;;  %1965 = vmatpush.msra.mxu0 %v1964_v60 }
 0xee8   :  { %v1656_v24 = vmul.f32 %v2270_v55, %v1655_v58 }
 0xeea   :  { %v1657_v25 = vadd.f32 %v2270_v55, %v1656_v24  ;;  %v1995_v24 = vand.u32 4294901760, %v1994_v61 }
 0xeec   :  { %v1661_v2 = vsel %vm1660_vm3, %v2270_v55, %v1657_v25  ;;  %v1966_v55 = vand.u32 4294901760, %v1943_v57  ;;  %v1996_v1 = vsub.f32 %v1994_v61, %v1995_v24 }
 0xeed   :  { %v1666_v7 = vsel %vm1663_vm4, %v1665_v28, %v1661_v2 }
 0xeee   :  { %v1669_v62 = vmul.f32 %v1666_v7, %v2730_v40  ;;  %v2000_v58 = vsub.f32 %v1943_v57, %v1966_v55  ;;  %1967 = vmatpush.msra.mxu0 %v1966_v55  ;;  %v1997_v2 = vand.u32 4294901760, %v1996_v1 }
 0xef0   :  { %v2001_v25 = vand.u32 4294901760, %v2000_v58  ;;  %1998 = vmatpush.msra.mxu1 %v1997_v2 }
 0xef2   :  { %v2002_v0 = vsub.f32 %v2000_v58, %v2001_v25 }
 0xef4   :  { %v2003_v28 = vand.u32 4294901760, %v2002_v0 }
 0xef6   :  { %2004 = vmatpush.msra.mxu1 %v2003_v28 }
 0xf4b   :  { %v1672_v59 = vpop.permute.xlu1 %1671 }
 0xf4c   :  { %v1674_v9 = vmul.f32 %v1672_v59, %v1666_v7 }
 0xf4e   :  { %1676 = vrot.lane.b32.xlu2 %v1674_v9, %s2378_s17 }
 0xfa8   :  { %v1677_v30 = vpop.permute.xlu2 %1676 }
 0xfa9   :  { %v2758_v6 = vadd.f32 %v1677_v30, %v1669_v62 }
 0xfab   :  { %2271 = vtanh.f32 %v2758_v6 }
 0xfb1   :  { %v2272_v63 = vpop.eup %2271 }
 0xfb2   :  { %1682 = vrot.lane.b32.xlu0 %v2272_v63, %s2377_s16  ;;  %v1942_v63 = vld [vmem:[%s2801_s3 + $0x8] sm:$0xff] }
0x1024   :  { %v1683_v13 = vpop.permute.xlu0 %1682 }
0x1025   :  { %v1685_v17 = vmul.f32 %v1683_v13, %v1666_v7  ;;  %v1968_v13 = vand.u32 4294901760, %v1942_v63 }
0x1027   :  { %v1690_v20 = vperm.slane %v1685_v17, 0  ;;  %v1941_v17 = vld [vmem:[%s2801_s3] sm:$0xff]  ;;  %1969 = vmatpush.msra.mxu0 %v1968_v13 }
0x1029   :  { %1691 = vrot.lane.b32.xlu1 %v1690_v20, %s2378_s17  ;;  %v2764_v21 = vsel %vm1937_vm5, %v2736_v45, %v1690_v20  ;;  %v2006_v20 = vsub.f32 %v1942_v63, %v1968_v13 }
0x109b   :  { %v1692_v22 = vpop.permute.xlu1 %1691 }
0x109c   :  { %v1693_v23 = vsel %vm61_vm0, %v1692_v22, 0  ;;  %v1970_v22 = vand.u32 4294901760, %v1941_v17 }
0x109d   :  { %v1715_v26 = vand.u32 4294901760, %v1693_v23 }
0x109e   :  { %1971 = vmatpush.msra.mxu0 %v1970_v22 }
0x109f   :  { %v1716_v27 = vsub.f32 %v1693_v23, %v1715_v26  ;;  %1761 = vmatmul.f32.vlgmr.msra.gmra.mxu3 %v1715_v26  ;;  %v2007_v23 = vand.u32 4294901760, %v2006_v20 }
0x10a0   :  { %2065 = vmatpush.msra.mxu3 %v1964_v60 }
0x10a1   :  { %v1717_v29 = vand.u32 4294901760, %v1716_v27  ;;  %1791 = vmatmul.f32.vlgmr.msrb.gmra.mxu0 %v1716_v27 }
0x10a2   :  { %2067 = vmatpush.msra.mxu3 %v1966_v55  ;;  %2094 = vmatpush.msrb.mxu0 %v1995_v24 }
0x10a3   :  { %v1718_v31 = vsub.f32 %v1716_v27, %v1717_v29  ;;  %1818 = vmatmul.f32.vlgmr.msrb.gmra.mxu1 %v1717_v29 }
0x10a4   :  { %2069 = vmatpush.msra.mxu3 %v1968_v13  ;;  %2098 = vmatpush.msrb.mxu0 %v2001_v25 }
0x10a5   :  { %v1719_v32 = vand.u32 4294901760, %v1718_v31 }
0x10a6   :  { %2071 = vmatpush.msra.mxu3 %v1970_v22  ;;  %2102 = vmatpush.msrb.mxu0 %v2007_v23 }
0x10a7   :  { %1720 = vmatmul.f32.vlgmr.msra.gmra.mxu2 %v1719_v32  ;;  %1876 = vmatmul.f32.vlgmr.msrb.gmra.mxu3 %v1715_v26 }
0x10a8   :  { %2036 = vmatpush.msra.mxu2 %v1994_v61 }
0x10aa   :  { %2039 = vmatpush.msra.mxu2 %v2000_v58 }
0x10ac   :  { %2042 = vmatpush.msra.mxu2 %v2006_v20 }
0x10af   :  { %1851 = vmatmul.f32.vlgmr.msrb.gmra.mxu2 %v1715_v26  ;;  %v2012_v26 = vsub.f32 %v1941_v17, %v1970_v22 }
0x10b1   :  { %v2013_v27 = vand.u32 4294901760, %v2012_v26  ;;  %2045 = vmatpush.msra.mxu2 %v2012_v26 }
0x10b3   :  { %v2014_v31 = vsub.f32 %v2012_v26, %v2013_v27  ;;  %2106 = vmatpush.msrb.mxu0 %v2013_v27 }
0x10b5   :  { %v2015_v32 = vand.u32 4294901760, %v2014_v31 }
0x111e   :  { %v1792_v36 = vpop.f32.mrf.mxu0 }
0x1120   :  { %v1819_v38 = vpop.f32.mrf.mxu1 }
0x1122   :  { %v1762_v33 = vpop.f32.mrf.mxu3 }
0x112a   :  { %v1721_v34 = vpop.f32.mrf.mxu2  ;;  %v1877_v42 = vpop.f32.mrf.mxu3 }
0x112b   :  { %v1763_v35 = vadd.f32 %v1762_v33, %v1721_v34 }
0x112d   :  { %v1793_v37 = vadd.f32 %v1792_v36, %v1763_v35 }
0x112f   :  { %v1820_v39 = vadd.f32 %v1819_v38, %v1793_v37 }
0x1132   :  { %v1852_v40 = vpop.f32.mrf.mxu2 }
0x1133   :  { %v1853_v41 = vadd.f32 %v1852_v40, %v1820_v39 }
0x1135   :  { %v1878_v44 = vadd.f32 %v1877_v42, %v1853_v41  ;;  %v2216_v41 = vld [vmem:[%s2801_s3 + $0x20] ss:$0 sm:$0xff] }
0x1137   :  { %v1880_v45 = vadd.f32 %v1878_v44, %v1688_v43 }
0x1139   :  { %2273 = vtanh.f32 %v1880_v45  ;;  %v2207_v47 = vmul.f32 -1.442695, %v1880_v45 }
0x113b   :  { %2275 = vpow2.f32 %v2207_v47 }
0x113f   :  { %v2274_v46 = vpop.eup %2273 }
0x1140   :  { %1903 = vrot.lane.b32.xlu2 %v2274_v46, %s2377_s16 }
0x1141   :  { %v2276_v48 = vpop.eup %2275 }
0x1142   :  { %v1884_v49 = vadd.f32 1.0, %v2276_v48 }
0x1144   :  { %2277 = vrcp.f32 %v1884_v49  ;;  %v1896_v15 = vand.u32 2147483648, %v1884_v49  ;;  %vm1890_vm7 = vweird.f32 %v1884_v49  ;;  %v1894_v10 = vand.u32 2147483647, %v1884_v49 }
0x1146   :  { %v1897_v5 = vor.u32 1.1754944e-38, %v1896_v15  ;;  %vm1895_vm9 = vcmp.eq.f32.partialorder %v1894_v10, 8.507059e+37 }
0x114a   :  { %v2278_v50 = vpop.eup %2277 }
0x114b   :  { %v1886_v51 = vmul.f32 %v2278_v50, %v1884_v49  ;;  %vm1891_vm6 = vweird.f32 %v2278_v50 }
0x114c   :  { %vm1892_vm8 = vmor %vm1890_vm7, %vm1891_vm6 }
0x114d   :  { %v1887_v53 = vsub.f32 1.0, %v1886_v51 }
0x114f   :  { %v1888_v3 = vmul.f32 %v2278_v50, %v1887_v53 }
0x1151   :  { %v1889_v4 = vadd.f32 %v2278_v50, %v1888_v3 }
0x1153   :  { %v1893_v16 = vsel %vm1892_vm8, %v2278_v50, %v1889_v4 }
0x1154   :  { %v1898_v18 = vsel %vm1895_vm9, %v1897_v5, %v1893_v16 }
0x1155   :  { %v1901_v11 = vmul.f32 %v1898_v18, %v2758_v6 }
0x119a   :  { %v1904_v54 = vpop.permute.xlu2 %1903 }
0x119b   :  { %v1906_v56 = vmul.f32 %v1904_v54, %v1898_v18 }
0x119d   :  { %1908 = vrot.lane.b32.xlu0 %v1906_v56, %s2378_s17 }
0x120f   :  { %v1909_v8 = vpop.permute.xlu0 %1908 }
0x1210   :  { %v1911_v52 = vadd.f32 %v1909_v8, %v1901_v11 }
0x1212   :  { %2279 = vtanh.f32 %v1911_v52  ;;  %v2140_v19 = vperm.slane %v1911_v52, 0 }
0x1214   :  { %2141 = vrot.lane.b32.xlu0 %v2140_v19, %s2377_s16 }
0x1218   :  { %v2280_v12 = vpop.eup %2279 }
0x1219   :  { %1914 = vrot.lane.b32.xlu1 %v2280_v12, %s2377_s16  ;;  %s2169_s16 = sshll.u32 %s2804_s6, 4  ;;  %s2170_s16 = int_to_ptr.hbm [resolvable:$true] %s2169_s16 }
0x1286   :  { %v2142_v9 = vpop.permute.xlu0 %2141 }
0x128b   :  { %v1915_v59 = vpop.permute.xlu1 %1914 }
0x128c   :  { %v1917_v7 = vmul.f32 %v1915_v59, %v1898_v18 }
0x128e   :  { %v1925_v62 = vperm.slane %v1917_v7, 0  ;;  %v2144_v30 = vsel %vm1927_vm13, %v1917_v7, %v2142_v9  ;;  %vm2149_vm13 = vcmask 254976  }
0x128f   :  { %2146 = vrot.lane.b32.xlu1 %v2144_v30, %s2378_s17 }
0x1290   :  { %v1940_v6 = vsel %vm1939_vm10, %v2764_v21, %v1925_v62  ;;  %v2008_v21 = vsub.f32 %v2006_v20, %v2007_v23 }
0x1291   :  { %1948 = vrot.lane.b32.xlu2 %v1940_v6, %s2378_s17 }
0x1292   :  { %v2009_v29 = vand.u32 4294901760, %v2008_v21 }
0x1294   :  { %2010 = vmatpush.msra.mxu1 %v2009_v29 }
0x1296   :  { %2016 = vmatpush.msra.mxu1 %v2015_v32 }
0x1298   :  { %2125 = vmatpush.msrb.mxu1 %v1964_v60 }
0x129a   :  { %2127 = vmatpush.msrb.mxu1 %v1966_v55 }
0x129c   :  { %2129 = vmatpush.msrb.mxu1 %v1968_v13 }
0x129e   :  { %2131 = vmatpush.msrb.mxu1 %v1970_v22 }
0x12eb   :  { %v1949_v33 = vpop.permute.xlu2 %1948 }
0x12ec   :  { %v1950_v34 = vsel %vm61_vm0, %v1949_v33, 0  ;;  %vm2137_vm0 = vcmask 64512  }
0x12ed   :  { %v1972_v35 = vand.u32 4294901760, %v1950_v34 }
0x12ef   :  { %v1973_v36 = vsub.f32 %v1950_v34, %v1972_v35  ;;  %2018 = vmatmul.f32.vlgmr.msra.gmra.mxu1 %v1972_v35 }
0x12f1   :  { %v1974_v37 = vand.u32 4294901760, %v1973_v36  ;;  %2048 = vmatmul.f32.vlgmr.msra.gmra.mxu2 %v1973_v36 }
0x12f3   :  { %v1975_v38 = vsub.f32 %v1973_v36, %v1974_v37  ;;  %2075 = vmatmul.f32.vlgmr.msra.gmra.mxu3 %v1974_v37 }
0x12f5   :  { %v1976_v39 = vand.u32 4294901760, %v1975_v38 }
0x12f7   :  { %1977 = vmatmul.f32.vlgmr.msra.gmra.mxu0 %v1976_v39  ;;  %2133 = vmatmul.f32.vlgmr.msrb.gmra.mxu1 %v1972_v35 }
0x12ff   :  { %2108 = vmatmul.f32.vlgmr.msrb.gmra.mxu0 %v1972_v35 }
0x1301   :  { %v2147_v40 = vpop.permute.xlu1 %2146 }
0x1302   :  { %2150 = vst.msk [vmem:[#allocation8] sm:$0x3] %vm2149_vm13, %v2147_v40 }
0x1303   :  { %2172 = dma.vmem_to_hbm [thread:$0]  %s2168_s15, 32, %s2170_s16, [#allocation9]  }
0x136c   :  { %v2019_v42 = vpop.f32.mrf.mxu1 }
0x1374   :  { %v1978_v43 = vpop.f32.mrf.mxu0  ;;  %v2049_v46 = vpop.f32.mrf.mxu2 }
0x1375   :  { %v1979_v44 = vadd.f32 %v2216_v41, %v1978_v43  ;;  %v2134_v53 = vpop.f32.mrf.mxu1 }
0x1376   :  { %v2076_v48 = vpop.f32.mrf.mxu3 }
0x1377   :  { %v2020_v45 = vadd.f32 %v2019_v42, %v1979_v44 }
0x1379   :  { %v2050_v47 = vadd.f32 %v2049_v46, %v2020_v45 }
0x137b   :  { %v2077_v49 = vadd.f32 %v2076_v48, %v2050_v47 }
0x137c   :  { %v2109_v50 = vpop.f32.mrf.mxu0 }
0x137d   :  { %v2110_v51 = vadd.f32 %v2109_v50, %v2077_v49 }
0x137f   :  { %v2135_v3 = vadd.f32 %v2134_v53, %v2110_v51 }
0x1381   :  { %2138 = vst.msk [vmem:[#allocation7] sm:$0xff] %vm2137_vm0, %v2135_v3 }
0x1382   :  { %2161 = dma.vmem_to_hbm [thread:$0]  %s2157_s20, 128, %s2159_s22, [#allocation4]  }
0x1383   :  { %2369 = dma.done.wait [#allocation4], 128  }
0x1384   :  { %2370 = vsyncadd [#allocation4], 4294967168 }
0x1385   :  { %2371 = dma.done.wait [#allocation9], 32  }
0x1386   :  { %2372 = vsyncadd [#allocation9], 4294967264 }
0x1387   :  { %2181 = vsyncpa [#allocation3], 1 }
0x1388   :  { %2182 = vsyncpa [#allocation4], 1 }
0x1389   :  { %2183 = vsyncpa [#allocation9], 1 }
0x138a   :  { %2184 = vsyncpa [#allocation5], 1 }

</bundles_post_ra>
